<compile_context>
chip_gen: v6e
topology: v6e:2x2x1
jax: 0.10.0
libtpu: 0.0.40
codegen_flags: <defaults>
</compile_context>

<pallas_src>
import functools

import jax
import jax.numpy as jnp
from jax import lax
from jax.experimental import pallas as pl
from jax.experimental.pallas import tpu as pltpu


# ----------------------------- fused Pallas kernel ---------------------------

def _fused_net_kernel(xe_ref, m1_ref, b1_ref, m2_ref, b2_ref,
                      wf1_ref, bf1_ref, wf2_ref, bf2_ref, out_ref,
                      h1_scr, *, bn):
    """Whole Net forward for `bn` images, entirely in VMEM.

    xe_ref : (12*bn, 168) bf16  height-band-expanded input, rows = (oh1, image)
    m1_ref : (168, 512)   bf16  conv1 matrix; 4 pool parities in 128-lane groups
    b1_ref : (1, 128)     f32   conv1 bias tiled over pooled columns (pad 0)
    m2_ref : (6, 128, 512) bf16 conv2 band matrices (one per relative row j)
    b2_ref : (1, 128)     f32
    wf1_ref: (4, 128, 50) bf16  fc1 weight regrouped per conv2 output row
    bf1_ref: (1, 50)      f32
    wf2_ref: (50, 10)     bf16
    bf2_ref: (1, 10)      f32
    out_ref: (bn, 10)     f32   log-probabilities
    h1_scr : (12*bn, 128) f32   VMEM scratch for the pooled conv1 activation
    """
    f32 = jnp.float32
    bf16 = jnp.bfloat16

    # ---- conv1 + 2x2 max-pool: single batched matmul; the four pool parities
    #      (height/width even/odd) live in the four 128-lane output groups.
    c1 = jnp.dot(xe_ref[...], m1_ref[...], preferred_element_type=f32)  # (12bn,512)
    p1 = jnp.maximum(jnp.maximum(c1[:, 0:128], c1[:, 128:256]),
                     jnp.maximum(c1[:, 256:384], c1[:, 384:512]))       # (12bn,128)
    h1_scr[...] = jnp.maximum(p1 + b1_ref[...], 0.0)                    # relu

    # ---- conv2 + 2x2 max-pool (Dropout2d == identity): 6 band matmuls, one
    #      per relative input row j; bands are assembled from sublane-aligned
    #      (bn, 128) chunks of h1 (h1 rows are ordered (spatial_row, image)).
    c2 = jnp.zeros((4 * bn, 512), f32)
    for j in range(6):
        band = jnp.concatenate(
            [h1_scr[(j + 2 * r) * bn:(j + 2 * r + 1) * bn, :] for r in range(4)],
            axis=0).astype(bf16)                                        # (4bn,128)
        c2 = c2 + jnp.dot(band, m2_ref[j], preferred_element_type=f32)  # (4bn,512)
    p2 = jnp.maximum(jnp.maximum(c2[:, 0:128], c2[:, 128:256]),
                     jnp.maximum(c2[:, 256:384], c2[:, 384:512]))       # (4bn,128)
    h2 = jnp.maximum(p2 + b2_ref[...], 0.0)

    # ---- fc1 (320 -> 50) + relu: 4 accumulated (bn,128)x(128,50) matmuls.
    #      torch's x.view(-1, 320) NCHW order is folded into wf1's regrouping.
    #      (F.dropout == identity.)
    f1 = jnp.zeros((bn, 50), f32)
    for r in range(4):
        f1 = f1 + jnp.dot(h2[r * bn:(r + 1) * bn, :].astype(bf16), wf1_ref[r],
                          preferred_element_type=f32)
    f1 = jnp.maximum(f1 + bf1_ref[...], 0.0)                            # (bn, 50)

    # ---- fc2 (50 -> 10) + log_softmax(dim=1), one full-block store.
    y = jnp.dot(f1.astype(bf16), wf2_ref[...], preferred_element_type=f32)
    y = y + bf2_ref[...]
    m = jnp.max(y, axis=-1, keepdims=True)
    lse = jnp.log(jnp.sum(jnp.exp(y - m), axis=-1, keepdims=True))
    out_ref[...] = (y - m - lse).astype(out_ref.dtype)


# --------------------------- host-side weight prep ---------------------------

def _conv1_pool_matrix(w1):
    """w1: (10, 1, 5, 5) -> (168, 512).

    K index = j*28 + w  (j = row inside the 6-row band, w = input column).
    N index = p*128 + ow*10 + co with p = 2*hp + wp the 2x2-pool parity.
    Folds the kh/kw contraction AND the whole 2x2 max-pool (as a lane-group
    max done in the kernel) into one lane-dense matmul.
    """
    wk = jnp.transpose(w1[:, 0], (1, 2, 0))                 # (kh, kw, co)
    j = jnp.arange(6)[:, None, None]
    w = jnp.arange(28)[None, :, None]
    ow = jnp.arange(12)[None, None, :]
    m = jnp.zeros((6, 28, 512), jnp.float32)
    for hp in range(2):
        for wp in range(2):
            kh = j - hp
            kw = w - 2 * ow - wp
            valid = (kh >= 0) & (kh <= 4) & (kw >= 0) & (kw <= 4)   # (6,28,12)
            blk = wk[jnp.clip(kh, 0, 4), jnp.clip(kw, 0, 4)]        # (6,28,12,10)
            blk = jnp.where(valid[..., None], blk, 0.0)
            p = 2 * hp + wp
            m = m.at[:, :, p * 128:p * 128 + 120].set(blk.reshape(6, 28, 120))
    return m.reshape(168, 512)


def _conv2_pool_matrices(w2):
    """w2: (20, 10, 5, 5) -> (6, 128, 512).

    Band matrix for relative input row j: K lane = wcol*10 + cin (h1 layout),
    N index = p*128 + ow*20 + co with p = 2*hp + wp the 2x2-pool parity.
    """
    wk = jnp.transpose(w2, (2, 3, 1, 0))                    # (kh, kw, cin, co)
    j = jnp.arange(6)[:, None, None]
    wc = jnp.arange(12)[None, :, None]
    ow = jnp.arange(4)[None, None, :]
    m = jnp.zeros((6, 128, 512), jnp.float32)
    for hp in range(2):
        for wp in range(2):
            kh = j - hp
            kw = wc - 2 * ow - wp
            valid = (kh >= 0) & (kh <= 4) & (kw >= 0) & (kw <= 4)   # (6,12,4)
            blk = wk[jnp.clip(kh, 0, 4), jnp.clip(kw, 0, 4)]        # (6,12,4,10,20)
            blk = jnp.where(valid[..., None, None], blk, 0.0)
            blk = jnp.transpose(blk, (0, 1, 3, 2, 4)).reshape(6, 120, 80)
            p = 2 * hp + wp
            m = m.at[:, :120, p * 128:p * 128 + 80].set(blk)
    return m


# --------------------------------- forward -----------------------------------

def forward(x, params, *, block_n=128):
    """x: (N, 1, 28, 28) float32 NCHW -> (N, 10) log-probabilities."""
    n = x.shape[0]
    assert x.shape[1:] == (1, 28, 28), x.shape
    f32, bf16 = jnp.float32, jnp.bfloat16
    w1, b1 = params["w1"].astype(f32), params["b1"].astype(f32)
    w2, b2 = params["w2"].astype(f32), params["b2"].astype(f32)
    fw1, fb1 = params["fw1"].astype(f32), params["fb1"].astype(f32)
    fw2, fb2 = params["fw2"].astype(f32), params["fb2"].astype(f32)

    # Batch tiling: bn images per grid step.  bn is a multiple of 8 so every
    # in-kernel row slice stays sublane aligned, and it is capped at ~ceil(N/2)
    # so the "parallel" batch axis keeps >= 2 grid steps (v7x megacore).
    bn = max(8, min(block_n, ((n + 1) // 2 + 7) // 8 * 8))
    bn = (bn // 8) * 8
    pad = (-n) % bn
    n_pad = n + pad
    g = n_pad // bn

    # Precomputed lane-dense conv/pool matrices and regrouped fc weights
    # (bf16 operands, f32 accumulation happens on the MXU).
    m1 = _conv1_pool_matrix(w1).astype(bf16)                       # (168, 512)
    m2 = _conv2_pool_matrices(w2).astype(bf16)                     # (6, 128, 512)
    b1p = jnp.zeros((1, 128), f32).at[0, :120].set(jnp.tile(b1, 12))
    b2p = jnp.zeros((1, 128), f32).at[0, :80].set(jnp.tile(b2, 4))
    # fc1 weight regrouped so chunk r multiplies h2 lanes (ow*20 + co); this
    # matches torch's x.view(-1, 320) on the NCHW (20, 4, 4) feature map.
    wf1 = jnp.transpose(fw1.reshape(20, 4, 4, 50), (1, 2, 0, 3)).reshape(4, 80, 50)
    wf1p = jnp.zeros((4, 128, 50), f32).at[:, :80, :].set(wf1).astype(bf16)
    bf1 = fb1.reshape(1, 50)
    wf2 = fw2.astype(bf16)                                         # (50, 10)
    bf2 = fb2.reshape(1, 10)

    # Host-side height-band expansion of the input: for each pooled output row
    # oh1 the six input rows 2*oh1 .. 2*oh1+5, flattened to 168 lanes.  Rows
    # are reordered (block, oh1, image) so each grid block is one contiguous
    # (12*bn, 168) slab and the kernel never reshapes.
    xs = x.reshape(n, 28, 28).astype(f32)
    if pad:
        xs = jnp.concatenate([xs, jnp.zeros((pad, 28, 28), f32)], axis=0)
    idx = 2 * jnp.arange(12)[:, None] + jnp.arange(6)[None, :]     # (12, 6)
    xe = xs[:, idx, :].reshape(n_pad, 12, 168)
    xe = xe.reshape(g, bn, 12, 168).transpose(0, 2, 1, 3).reshape(g * 12 * bn, 168)
    xe = xe.astype(bf16)

    def _resident(a):
        # Full-array block, constant index_map: fetched once, stays in VMEM.
        return pl.BlockSpec(a.shape, lambda i, nd=a.ndim: (0,) * nd)

    out = pl.pallas_call(
        functools.partial(_fused_net_kernel, bn=bn),
        out_shape=jax.ShapeDtypeStruct((n_pad, 10), f32),
        grid=(g,),
        in_specs=[
            pl.BlockSpec((12 * bn, 168), lambda i: (i, 0)),
            _resident(m1), _resident(b1p),
            _resident(m2), _resident(b2p),
            _resident(wf1p), _resident(bf1),
            _resident(wf2), _resident(bf2),
        ],
        out_specs=pl.BlockSpec((bn, 10), lambda i: (i, 0)),
        scratch_shapes=[pltpu.VMEM((12 * bn, 128), jnp.float32)],
        compiler_params=pltpu.CompilerParams(
            dimension_semantics=("parallel",),
            vmem_limit_bytes=48 * 1024 * 1024),
    )(xe, m1, b1p, m2, b2p, wf1p, bf1, wf2, bf2)
    return out[:n]


# ----------------------------- pure-JAX reference ----------------------------

def reference_forward(x, params):
    hp = lax.Precision.HIGHEST
    dn = ("NCHW", "OIHW", "NCHW")
    c1 = lax.conv_general_dilated(x, params["w1"], (1, 1), "VALID",
                                  dimension_numbers=dn, precision=hp)
    c1 = c1 + params["b1"][None, :, None, None]
    p1 = lax.reduce_window(c1, -jnp.inf, lax.max, (1, 1, 2, 2), (1, 1, 2, 2), "VALID")
    h1 = jnp.maximum(p1, 0.0)
    c2 = lax.conv_general_dilated(h1, params["w2"], (1, 1), "VALID",
                                  dimension_numbers=dn, precision=hp)
    c2 = c2 + params["b2"][None, :, None, None]
    p2 = lax.reduce_window(c2, -jnp.inf, lax.max, (1, 1, 2, 2), (1, 1, 2, 2), "VALID")
    h2 = jnp.maximum(p2, 0.0)
    flat = h2.reshape(x.shape[0], 320)
    f1 = jnp.maximum(jnp.dot(flat, params["fw1"], precision=hp) + params["fb1"], 0.0)
    y = jnp.dot(f1, params["fw2"], precision=hp) + params["fb2"]
    return jax.nn.log_softmax(y, axis=1)


# ----------------------------------- main -------------------------------------

if __name__ == "__main__":
    key = jax.random.PRNGKey(0)
    ks = jax.random.split(key, 9)
    params = {
        "w1": 0.10 * jax.random.normal(ks[0], (10, 1, 5, 5), jnp.float32),
        "b1": 0.10 * jax.random.normal(ks[1], (10,), jnp.float32),
        "w2": 0.10 * jax.random.normal(ks[2], (20, 10, 5, 5), jnp.float32),
        "b2": 0.10 * jax.random.normal(ks[3], (20,), jnp.float32),
        "fw1": 0.05 * jax.random.normal(ks[4], (320, 50), jnp.float32),
        "fb1": 0.05 * jax.random.normal(ks[5], (50,), jnp.float32),
        "fw2": 0.10 * jax.random.normal(ks[6], (50, 10), jnp.float32),
        "fb2": 0.10 * jax.random.normal(ks[7], (10,), jnp.float32),
    }
    # MNIST-shaped input (28x28 is required by the hard-coded .view(-1, 320)).
    # Batch 16 -> bn=8, grid=(2,): exercises the multi-step "parallel" grid.
    x = jax.random.normal(ks[8], (16, 1, 28, 28), jnp.float32)

    out = jax.block_until_ready(jax.jit(forward)(x, params))
    assert out.shape == (16, 10), out.shape

    # log_softmax sanity: exp(rows) sum to 1
    row_sums = jnp.sum(jnp.exp(out), axis=1)
    assert bool(jnp.all(jnp.abs(row_sums - 1.0) < 1e-4)), row_sums

    # cross-check against a pure-JAX/XLA reference of the same module
    # (bf16 matmul operands in the kernel, f32 accumulation -> loose-ish tol)
    ref = jax.block_until_ready(jax.jit(reference_forward)(x, params))
    max_err = float(jnp.max(jnp.abs(out - ref)))
    assert max_err < 5e-2, f"mismatch vs reference: {max_err}"

    print("KERNEL_OK")
</pallas_src>

<mosaic_0001>
module attributes {stable_mosaic.version = 11 : i64} {
  func.func @_fused_net_kernel(%arg0: i32, %arg1: memref<96x168xbf16, #tpu.memory_space<vmem>>, %arg2: memref<168x512xbf16, #tpu.memory_space<vmem>>, %arg3: memref<1x128xf32, #tpu.memory_space<vmem>>, %arg4: memref<6x128x512xbf16, #tpu.memory_space<vmem>>, %arg5: memref<1x128xf32, #tpu.memory_space<vmem>>, %arg6: memref<4x128x50xbf16, #tpu.memory_space<vmem>>, %arg7: memref<1x50xf32, #tpu.memory_space<vmem>>, %arg8: memref<50x10xbf16, #tpu.memory_space<vmem>>, %arg9: memref<1x10xf32, #tpu.memory_space<vmem>>, %arg10: memref<8x10xf32, #tpu.memory_space<vmem>>, %arg11: memref<96x128xf32, #tpu.memory_space<vmem>>) attributes {dimension_semantics = [#tpu.dimension_semantics<parallel>], iteration_bounds = array<i64: 2>, scalar_prefetch = 0 : i64, scratch_operands = 1 : i64, tpu.core_type = #tpu.core_type<tc>, window_params = [{transform_indices = @transform_0, window_bounds = array<i64: 96, 168>}, {pipeline_mode = #tpu.pipeline_mode<synchronous>, transform_indices = @transform_1, window_bounds = array<i64: 168, 512>}, {pipeline_mode = #tpu.pipeline_mode<synchronous>, transform_indices = @transform_2, window_bounds = array<i64: 1, 128>}, {pipeline_mode = #tpu.pipeline_mode<synchronous>, transform_indices = @transform_3, window_bounds = array<i64: 6, 128, 512>}, {pipeline_mode = #tpu.pipeline_mode<synchronous>, transform_indices = @transform_4, window_bounds = array<i64: 1, 128>}, {pipeline_mode = #tpu.pipeline_mode<synchronous>, transform_indices = @transform_5, window_bounds = array<i64: 4, 128, 50>}, {pipeline_mode = #tpu.pipeline_mode<synchronous>, transform_indices = @transform_6, window_bounds = array<i64: 1, 50>}, {pipeline_mode = #tpu.pipeline_mode<synchronous>, transform_indices = @transform_7, window_bounds = array<i64: 50, 10>}, {pipeline_mode = #tpu.pipeline_mode<synchronous>, transform_indices = @transform_8, window_bounds = array<i64: 1, 10>}, {transform_indices = @transform_9, window_bounds = array<i64: 8, 10>}]} {
    %c0 = arith.constant 0 : index
    %c0_0 = arith.constant 0 : index
    %0 = vector.load %arg1[%c0, %c0_0] : memref<96x168xbf16, #tpu.memory_space<vmem>>, vector<96x168xbf16>
    %c0_1 = arith.constant 0 : index
    %c0_2 = arith.constant 0 : index
    %1 = vector.load %arg2[%c0_1, %c0_2] : memref<168x512xbf16, #tpu.memory_space<vmem>>, vector<168x512xbf16>
    %cst = arith.constant dense<0.000000e+00> : vector<96x512xf32>
    %2 = tpu.matmul %0, %1, %cst {dimension_numbers = #tpu.dot_dimension_numbers<[1], [0], [0], [1], [0, 0, 1, 1], [], []>} : vector<96x168xbf16>, vector<168x512xbf16>, vector<96x512xf32> -> vector<96x512xf32>
    %3 = vector.extract_strided_slice %2 {offsets = [0, 0], sizes = [96, 128], strides = [1, 1]} : vector<96x512xf32> to vector<96x128xf32>
    %4 = vector.extract_strided_slice %2 {offsets = [0, 128], sizes = [96, 128], strides = [1, 1]} : vector<96x512xf32> to vector<96x128xf32>
    %5 = arith.maximumf %3, %4 : vector<96x128xf32>
    %6 = vector.extract_strided_slice %2 {offsets = [0, 256], sizes = [96, 128], strides = [1, 1]} : vector<96x512xf32> to vector<96x128xf32>
    %7 = vector.extract_strided_slice %2 {offsets = [0, 384], sizes = [96, 128], strides = [1, 1]} : vector<96x512xf32> to vector<96x128xf32>
    %8 = arith.maximumf %6, %7 : vector<96x128xf32>
    %9 = arith.maximumf %5, %8 : vector<96x128xf32>
    %c0_3 = arith.constant 0 : index
    %c0_4 = arith.constant 0 : index
    %10 = vector.load %arg3[%c0_3, %c0_4] : memref<1x128xf32, #tpu.memory_space<vmem>>, vector<1x128xf32>
    %11 = vector.broadcast %10 : vector<1x128xf32> to vector<96x128xf32>
    %12 = arith.addf %9, %11 : vector<96x128xf32>
    %cst_5 = arith.constant 0.000000e+00 : f32
    %13 = vector.broadcast %cst_5 : f32 to vector<96x128xf32>
    %14 = arith.maximumf %12, %13 : vector<96x128xf32>
    %c0_6 = arith.constant 0 : index
    %c0_7 = arith.constant 0 : index
    %15 = vector.load %arg11[%c0_6, %c0_7] : memref<96x128xf32, #tpu.memory_space<vmem>>, vector<96x128xf32>
    tpu.vector_store %arg11[%c0_6, %c0_7], %14 {strides = array<i32>} : memref<96x128xf32, #tpu.memory_space<vmem>>, vector<96x128xf32>,
    %cst_8 = arith.constant 0.000000e+00 : f32
    %16 = vector.broadcast %cst_8 : f32 to vector<32x512xf32>
    %c0_9 = arith.constant 0 : index
    %c0_10 = arith.constant 0 : index
    %17 = vector.load %arg11[%c0_9, %c0_10] : memref<96x128xf32, #tpu.memory_space<vmem>>, vector<8x128xf32>
    %c16 = arith.constant 16 : index
    %c0_11 = arith.constant 0 : index
    %18 = vector.load %arg11[%c16, %c0_11] : memref<96x128xf32, #tpu.memory_space<vmem>>, vector<8x128xf32>
    %c32 = arith.constant 32 : index
    %c0_12 = arith.constant 0 : index
    %19 = vector.load %arg11[%c32, %c0_12] : memref<96x128xf32, #tpu.memory_space<vmem>>, vector<8x128xf32>
    %c48 = arith.constant 48 : index
    %c0_13 = arith.constant 0 : index
    %20 = vector.load %arg11[%c48, %c0_13] : memref<96x128xf32, #tpu.memory_space<vmem>>, vector<8x128xf32>
    %21 = tpu.concatenate %17, %18, %19, %20 in 0 : vector<8x128xf32>, vector<8x128xf32>, vector<8x128xf32>, vector<8x128xf32> -> vector<32x128xf32>
    %22 = arith.truncf %21 : vector<32x128xf32> to vector<32x128xbf16>
    %c0_14 = arith.constant 0 : index
    %c0_15 = arith.constant 0 : index
    %c0_16 = arith.constant 0 : index
    %23 = vector.load %arg4[%c0_14, %c0_15, %c0_16] : memref<6x128x512xbf16, #tpu.memory_space<vmem>>, vector<1x128x512xbf16>
    %24 = vector.shape_cast %23 : vector<1x128x512xbf16> to vector<128x512xbf16>
    %cst_17 = arith.constant dense<0.000000e+00> : vector<32x512xf32>
    %25 = tpu.matmul %22, %24, %cst_17 {dimension_numbers = #tpu.dot_dimension_numbers<[1], [0], [0], [1], [0, 0, 1, 1], [], []>} : vector<32x128xbf16>, vector<128x512xbf16>, vector<32x512xf32> -> vector<32x512xf32>
    %26 = arith.addf %16, %25 : vector<32x512xf32>
    %c8 = arith.constant 8 : index
    %c0_18 = arith.constant 0 : index
    %27 = vector.load %arg11[%c8, %c0_18] : memref<96x128xf32, #tpu.memory_space<vmem>>, vector<8x128xf32>
    %c24 = arith.constant 24 : index
    %c0_19 = arith.constant 0 : index
    %28 = vector.load %arg11[%c24, %c0_19] : memref<96x128xf32, #tpu.memory_space<vmem>>, vector<8x128xf32>
    %c40 = arith.constant 40 : index
    %c0_20 = arith.constant 0 : index
    %29 = vector.load %arg11[%c40, %c0_20] : memref<96x128xf32, #tpu.memory_space<vmem>>, vector<8x128xf32>
    %c56 = arith.constant 56 : index
    %c0_21 = arith.constant 0 : index
    %30 = vector.load %arg11[%c56, %c0_21] : memref<96x128xf32, #tpu.memory_space<vmem>>, vector<8x128xf32>
    %31 = tpu.concatenate %27, %28, %29, %30 in 0 : vector<8x128xf32>, vector<8x128xf32>, vector<8x128xf32>, vector<8x128xf32> -> vector<32x128xf32>
    %32 = arith.truncf %31 : vector<32x128xf32> to vector<32x128xbf16>
    %c1 = arith.constant 1 : index
    %c0_22 = arith.constant 0 : index
    %c0_23 = arith.constant 0 : index
    %33 = vector.load %arg4[%c1, %c0_22, %c0_23] : memref<6x128x512xbf16, #tpu.memory_space<vmem>>, vector<1x128x512xbf16>
    %34 = vector.shape_cast %33 : vector<1x128x512xbf16> to vector<128x512xbf16>
    %cst_24 = arith.constant dense<0.000000e+00> : vector<32x512xf32>
    %35 = tpu.matmul %32, %34, %cst_24 {dimension_numbers = #tpu.dot_dimension_numbers<[1], [0], [0], [1], [0, 0, 1, 1], [], []>} : vector<32x128xbf16>, vector<128x512xbf16>, vector<32x512xf32> -> vector<32x512xf32>
    %36 = arith.addf %26, %35 : vector<32x512xf32>
    %c16_25 = arith.constant 16 : index
    %c0_26 = arith.constant 0 : index
    %37 = vector.load %arg11[%c16_25, %c0_26] : memref<96x128xf32, #tpu.memory_space<vmem>>, vector<8x128xf32>
    %c32_27 = arith.constant 32 : index
    %c0_28 = arith.constant 0 : index
    %38 = vector.load %arg11[%c32_27, %c0_28] : memref<96x128xf32, #tpu.memory_space<vmem>>, vector<8x128xf32>
    %c48_29 = arith.constant 48 : index
    %c0_30 = arith.constant 0 : index
    %39 = vector.load %arg11[%c48_29, %c0_30] : memref<96x128xf32, #tpu.memory_space<vmem>>, vector<8x128xf32>
    %c64 = arith.constant 64 : index
    %c0_31 = arith.constant 0 : index
    %40 = vector.load %arg11[%c64, %c0_31] : memref<96x128xf32, #tpu.memory_space<vmem>>, vector<8x128xf32>
    %41 = tpu.concatenate %37, %38, %39, %40 in 0 : vector<8x128xf32>, vector<8x128xf32>, vector<8x128xf32>, vector<8x128xf32> -> vector<32x128xf32>
    %42 = arith.truncf %41 : vector<32x128xf32> to vector<32x128xbf16>
    %c2 = arith.constant 2 : index
    %c0_32 = arith.constant 0 : index
    %c0_33 = arith.constant 0 : index
    %43 = vector.load %arg4[%c2, %c0_32, %c0_33] : memref<6x128x512xbf16, #tpu.memory_space<vmem>>, vector<1x128x512xbf16>
    %44 = vector.shape_cast %43 : vector<1x128x512xbf16> to vector<128x512xbf16>
    %cst_34 = arith.constant dense<0.000000e+00> : vector<32x512xf32>
    %45 = tpu.matmul %42, %44, %cst_34 {dimension_numbers = #tpu.dot_dimension_numbers<[1], [0], [0], [1], [0, 0, 1, 1], [], []>} : vector<32x128xbf16>, vector<128x512xbf16>, vector<32x512xf32> -> vector<32x512xf32>
    %46 = arith.addf %36, %45 : vector<32x512xf32>
    %c24_35 = arith.constant 24 : index
    %c0_36 = arith.constant 0 : index
    %47 = vector.load %arg11[%c24_35, %c0_36] : memref<96x128xf32, #tpu.memory_space<vmem>>, vector<8x128xf32>
    %c40_37 = arith.constant 40 : index
    %c0_38 = arith.constant 0 : index
    %48 = vector.load %arg11[%c40_37, %c0_38] : memref<96x128xf32, #tpu.memory_space<vmem>>, vector<8x128xf32>
    %c56_39 = arith.constant 56 : index
    %c0_40 = arith.constant 0 : index
    %49 = vector.load %arg11[%c56_39, %c0_40] : memref<96x128xf32, #tpu.memory_space<vmem>>, vector<8x128xf32>
    %c72 = arith.constant 72 : index
    %c0_41 = arith.constant 0 : index
    %50 = vector.load %arg11[%c72, %c0_41] : memref<96x128xf32, #tpu.memory_space<vmem>>, vector<8x128xf32>
    %51 = tpu.concatenate %47, %48, %49, %50 in 0 : vector<8x128xf32>, vector<8x128xf32>, vector<8x128xf32>, vector<8x128xf32> -> vector<32x128xf32>
    %52 = arith.truncf %51 : vector<32x128xf32> to vector<32x128xbf16>
    %c3 = arith.constant 3 : index
    %c0_42 = arith.constant 0 : index
    %c0_43 = arith.constant 0 : index
    %53 = vector.load %arg4[%c3, %c0_42, %c0_43] : memref<6x128x512xbf16, #tpu.memory_space<vmem>>, vector<1x128x512xbf16>
    %54 = vector.shape_cast %53 : vector<1x128x512xbf16> to vector<128x512xbf16>
    %cst_44 = arith.constant dense<0.000000e+00> : vector<32x512xf32>
    %55 = tpu.matmul %52, %54, %cst_44 {dimension_numbers = #tpu.dot_dimension_numbers<[1], [0], [0], [1], [0, 0, 1, 1], [], []>} : vector<32x128xbf16>, vector<128x512xbf16>, vector<32x512xf32> -> vector<32x512xf32>
    %56 = arith.addf %46, %55 : vector<32x512xf32>
    %c32_45 = arith.constant 32 : index
    %c0_46 = arith.constant 0 : index
    %57 = vector.load %arg11[%c32_45, %c0_46] : memref<96x128xf32, #tpu.memory_space<vmem>>, vector<8x128xf32>
    %c48_47 = arith.constant 48 : index
    %c0_48 = arith.constant 0 : index
    %58 = vector.load %arg11[%c48_47, %c0_48] : memref<96x128xf32, #tpu.memory_space<vmem>>, vector<8x128xf32>
    %c64_49 = arith.constant 64 : index
    %c0_50 = arith.constant 0 : index
    %59 = vector.load %arg11[%c64_49, %c0_50] : memref<96x128xf32, #tpu.memory_space<vmem>>, vector<8x128xf32>
    %c80 = arith.constant 80 : index
    %c0_51 = arith.constant 0 : index
    %60 = vector.load %arg11[%c80, %c0_51] : memref<96x128xf32, #tpu.memory_space<vmem>>, vector<8x128xf32>
    %61 = tpu.concatenate %57, %58, %59, %60 in 0 : vector<8x128xf32>, vector<8x128xf32>, vector<8x128xf32>, vector<8x128xf32> -> vector<32x128xf32>
    %62 = arith.truncf %61 : vector<32x128xf32> to vector<32x128xbf16>
    %c4 = arith.constant 4 : index
    %c0_52 = arith.constant 0 : index
    %c0_53 = arith.constant 0 : index
    %63 = vector.load %arg4[%c4, %c0_52, %c0_53] : memref<6x128x512xbf16, #tpu.memory_space<vmem>>, vector<1x128x512xbf16>
    %64 = vector.shape_cast %63 : vector<1x128x512xbf16> to vector<128x512xbf16>
    %cst_54 = arith.constant dense<0.000000e+00> : vector<32x512xf32>
    %65 = tpu.matmul %62, %64, %cst_54 {dimension_numbers = #tpu.dot_dimension_numbers<[1], [0], [0], [1], [0, 0, 1, 1], [], []>} : vector<32x128xbf16>, vector<128x512xbf16>, vector<32x512xf32> -> vector<32x512xf32>
    %66 = arith.addf %56, %65 : vector<32x512xf32>
    %c40_55 = arith.constant 40 : index
    %c0_56 = arith.constant 0 : index
    %67 = vector.load %arg11[%c40_55, %c0_56] : memref<96x128xf32, #tpu.memory_space<vmem>>, vector<8x128xf32>
    %c56_57 = arith.constant 56 : index
    %c0_58 = arith.constant 0 : index
    %68 = vector.load %arg11[%c56_57, %c0_58] : memref<96x128xf32, #tpu.memory_space<vmem>>, vector<8x128xf32>
    %c72_59 = arith.constant 72 : index
    %c0_60 = arith.constant 0 : index
    %69 = vector.load %arg11[%c72_59, %c0_60] : memref<96x128xf32, #tpu.memory_space<vmem>>, vector<8x128xf32>
    %c88 = arith.constant 88 : index
    %c0_61 = arith.constant 0 : index
    %70 = vector.load %arg11[%c88, %c0_61] : memref<96x128xf32, #tpu.memory_space<vmem>>, vector<8x128xf32>
    %71 = tpu.concatenate %67, %68, %69, %70 in 0 : vector<8x128xf32>, vector<8x128xf32>, vector<8x128xf32>, vector<8x128xf32> -> vector<32x128xf32>
    %72 = arith.truncf %71 : vector<32x128xf32> to vector<32x128xbf16>
    %c5 = arith.constant 5 : index
    %c0_62 = arith.constant 0 : index
    %c0_63 = arith.constant 0 : index
    %73 = vector.load %arg4[%c5, %c0_62, %c0_63] : memref<6x128x512xbf16, #tpu.memory_space<vmem>>, vector<1x128x512xbf16>
    %74 = vector.shape_cast %73 : vector<1x128x512xbf16> to vector<128x512xbf16>
    %cst_64 = arith.constant dense<0.000000e+00> : vector<32x512xf32>
    %75 = tpu.matmul %72, %74, %cst_64 {dimension_numbers = #tpu.dot_dimension_numbers<[1], [0], [0], [1], [0, 0, 1, 1], [], []>} : vector<32x128xbf16>, vector<128x512xbf16>, vector<32x512xf32> -> vector<32x512xf32>
    %76 = arith.addf %66, %75 : vector<32x512xf32>
    %77 = vector.extract_strided_slice %76 {offsets = [0, 0], sizes = [32, 128], strides = [1, 1]} : vector<32x512xf32> to vector<32x128xf32>
    %78 = vector.extract_strided_slice %76 {offsets = [0, 128], sizes = [32, 128], strides = [1, 1]} : vector<32x512xf32> to vector<32x128xf32>
    %79 = arith.maximumf %77, %78 : vector<32x128xf32>
    %80 = vector.extract_strided_slice %76 {offsets = [0, 256], sizes = [32, 128], strides = [1, 1]} : vector<32x512xf32> to vector<32x128xf32>
    %81 = vector.extract_strided_slice %76 {offsets = [0, 384], sizes = [32, 128], strides = [1, 1]} : vector<32x512xf32> to vector<32x128xf32>
    %82 = arith.maximumf %80, %81 : vector<32x128xf32>
    %83 = arith.maximumf %79, %82 : vector<32x128xf32>
    %c0_65 = arith.constant 0 : index
    %c0_66 = arith.constant 0 : index
    %84 = vector.load %arg5[%c0_65, %c0_66] : memref<1x128xf32, #tpu.memory_space<vmem>>, vector<1x128xf32>
    %85 = vector.broadcast %84 : vector<1x128xf32> to vector<32x128xf32>
    %86 = arith.addf %83, %85 : vector<32x128xf32>
    %cst_67 = arith.constant 0.000000e+00 : f32
    %87 = vector.broadcast %cst_67 : f32 to vector<32x128xf32>
    %88 = arith.maximumf %86, %87 : vector<32x128xf32>
    %cst_68 = arith.constant 0.000000e+00 : f32
    %89 = vector.broadcast %cst_68 : f32 to vector<8x50xf32>
    %90 = vector.extract_strided_slice %88 {offsets = [0, 0], sizes = [8, 128], strides = [1, 1]} : vector<32x128xf32> to vector<8x128xf32>
    %91 = arith.truncf %90 : vector<8x128xf32> to vector<8x128xbf16>
    %c0_69 = arith.constant 0 : index
    %c0_70 = arith.constant 0 : index
    %c0_71 = arith.constant 0 : index
    %92 = vector.load %arg6[%c0_69, %c0_70, %c0_71] : memref<4x128x50xbf16, #tpu.memory_space<vmem>>, vector<1x128x50xbf16>
    %93 = vector.shape_cast %92 : vector<1x128x50xbf16> to vector<128x50xbf16>
    %cst_72 = arith.constant dense<0.000000e+00> : vector<8x50xf32>
    %94 = tpu.matmul %91, %93, %cst_72 {dimension_numbers = #tpu.dot_dimension_numbers<[1], [0], [0], [1], [0, 0, 1, 1], [], []>} : vector<8x128xbf16>, vector<128x50xbf16>, vector<8x50xf32> -> vector<8x50xf32>
    %95 = arith.addf %89, %94 : vector<8x50xf32>
    %96 = vector.extract_strided_slice %88 {offsets = [8, 0], sizes = [8, 128], strides = [1, 1]} : vector<32x128xf32> to vector<8x128xf32>
    %97 = arith.truncf %96 : vector<8x128xf32> to vector<8x128xbf16>
    %c1_73 = arith.constant 1 : index
    %c0_74 = arith.constant 0 : index
    %c0_75 = arith.constant 0 : index
    %98 = vector.load %arg6[%c1_73, %c0_74, %c0_75] : memref<4x128x50xbf16, #tpu.memory_space<vmem>>, vector<1x128x50xbf16>
    %99 = vector.shape_cast %98 : vector<1x128x50xbf16> to vector<128x50xbf16>
    %cst_76 = arith.constant dense<0.000000e+00> : vector<8x50xf32>
    %100 = tpu.matmul %97, %99, %cst_76 {dimension_numbers = #tpu.dot_dimension_numbers<[1], [0], [0], [1], [0, 0, 1, 1], [], []>} : vector<8x128xbf16>, vector<128x50xbf16>, vector<8x50xf32> -> vector<8x50xf32>
    %101 = arith.addf %95, %100 : vector<8x50xf32>
    %102 = vector.extract_strided_slice %88 {offsets = [16, 0], sizes = [8, 128], strides = [1, 1]} : vector<32x128xf32> to vector<8x128xf32>
    %103 = arith.truncf %102 : vector<8x128xf32> to vector<8x128xbf16>
    %c2_77 = arith.constant 2 : index
    %c0_78 = arith.constant 0 : index
    %c0_79 = arith.constant 0 : index
    %104 = vector.load %arg6[%c2_77, %c0_78, %c0_79] : memref<4x128x50xbf16, #tpu.memory_space<vmem>>, vector<1x128x50xbf16>
    %105 = vector.shape_cast %104 : vector<1x128x50xbf16> to vector<128x50xbf16>
    %cst_80 = arith.constant dense<0.000000e+00> : vector<8x50xf32>
    %106 = tpu.matmul %103, %105, %cst_80 {dimension_numbers = #tpu.dot_dimension_numbers<[1], [0], [0], [1], [0, 0, 1, 1], [], []>} : vector<8x128xbf16>, vector<128x50xbf16>, vector<8x50xf32> -> vector<8x50xf32>
    %107 = arith.addf %101, %106 : vector<8x50xf32>
    %108 = vector.extract_strided_slice %88 {offsets = [24, 0], sizes = [8, 128], strides = [1, 1]} : vector<32x128xf32> to vector<8x128xf32>
    %109 = arith.truncf %108 : vector<8x128xf32> to vector<8x128xbf16>
    %c3_81 = arith.constant 3 : index
    %c0_82 = arith.constant 0 : index
    %c0_83 = arith.constant 0 : index
    %110 = vector.load %arg6[%c3_81, %c0_82, %c0_83] : memref<4x128x50xbf16, #tpu.memory_space<vmem>>, vector<1x128x50xbf16>
    %111 = vector.shape_cast %110 : vector<1x128x50xbf16> to vector<128x50xbf16>
    %cst_84 = arith.constant dense<0.000000e+00> : vector<8x50xf32>
    %112 = tpu.matmul %109, %111, %cst_84 {dimension_numbers = #tpu.dot_dimension_numbers<[1], [0], [0], [1], [0, 0, 1, 1], [], []>} : vector<8x128xbf16>, vector<128x50xbf16>, vector<8x50xf32> -> vector<8x50xf32>
    %113 = arith.addf %107, %112 : vector<8x50xf32>
    %c0_85 = arith.constant 0 : index
    %c0_86 = arith.constant 0 : index
    %114 = vector.load %arg7[%c0_85, %c0_86] : memref<1x50xf32, #tpu.memory_space<vmem>>, vector<1x50xf32>
    %115 = vector.broadcast %114 : vector<1x50xf32> to vector<8x50xf32>
    %116 = arith.addf %113, %115 : vector<8x50xf32>
    %cst_87 = arith.constant 0.000000e+00 : f32
    %117 = vector.broadcast %cst_87 : f32 to vector<8x50xf32>
    %118 = arith.maximumf %116, %117 : vector<8x50xf32>
    %119 = arith.truncf %118 : vector<8x50xf32> to vector<8x50xbf16>
    %c0_88 = arith.constant 0 : index
    %c0_89 = arith.constant 0 : index
    %120 = vector.load %arg8[%c0_88, %c0_89] : memref<50x10xbf16, #tpu.memory_space<vmem>>, vector<50x10xbf16>
    %cst_90 = arith.constant dense<0.000000e+00> : vector<8x10xf32>
    %121 = tpu.matmul %119, %120, %cst_90 {dimension_numbers = #tpu.dot_dimension_numbers<[1], [0], [0], [1], [0, 0, 1, 1], [], []>} : vector<8x50xbf16>, vector<50x10xbf16>, vector<8x10xf32> -> vector<8x10xf32>
    %c0_91 = arith.constant 0 : index
    %c0_92 = arith.constant 0 : index
    %122 = vector.load %arg9[%c0_91, %c0_92] : memref<1x10xf32, #tpu.memory_space<vmem>>, vector<1x10xf32>
    %123 = vector.broadcast %122 : vector<1x10xf32> to vector<8x10xf32>
    %124 = arith.addf %121, %123 : vector<8x10xf32>
    %cst_93 = arith.constant dense<0xFF800000> : vector<8xf32>
    %125 = vector.multi_reduction <maximumf>, %124, %cst_93 [1] : vector<8x10xf32> to vector<8xf32>
    %126 = vector.shape_cast %125 : vector<8xf32> to vector<8x1xf32>
    %127 = vector.broadcast %126 : vector<8x1xf32> to vector<8x10xf32>
    %128 = arith.subf %124, %127 : vector<8x10xf32>
    %129 = math.exp %128 : vector<8x10xf32>
    %cst_94 = arith.constant dense<0.000000e+00> : vector<8xf32>
    %130 = vector.multi_reduction <add>, %129, %cst_94 [1] : vector<8x10xf32> to vector<8xf32>
    %131 = vector.shape_cast %130 : vector<8xf32> to vector<8x1xf32>
    %132 = math.log %131 : vector<8x1xf32>
    %133 = vector.broadcast %126 : vector<8x1xf32> to vector<8x10xf32>
    %134 = arith.subf %124, %133 : vector<8x10xf32>
    %135 = vector.broadcast %132 : vector<8x1xf32> to vector<8x10xf32>
    %136 = arith.subf %134, %135 : vector<8x10xf32>
    %c0_95 = arith.constant 0 : index
    %c0_96 = arith.constant 0 : index
    %137 = vector.load %arg10[%c0_95, %c0_96] : memref<8x10xf32, #tpu.memory_space<vmem>>, vector<8x10xf32>
    tpu.vector_store %arg10[%c0_95, %c0_96], %136 {strides = array<i32>} : memref<8x10xf32, #tpu.memory_space<vmem>>, vector<8x10xf32>,
    return
  }
  func.func @transform_0(%arg0: i32) -> (i32, i32) {
    %c0_i32 = arith.constant 0 : i32
    %c0_i32_0 = arith.constant 0 : i32
    return %arg0, %c0_i32 : i32, i32
  }
  func.func @transform_1(%arg0: i32) -> (i32, i32) {
    %c0_i32 = arith.constant 0 : i32
    %c0_i32_0 = arith.constant 0 : i32
    %c0_i32_1 = arith.constant 0 : i32
    return %c0_i32, %c0_i32_0 : i32, i32
  }
  func.func @transform_2(%arg0: i32) -> (i32, i32) {
    %c0_i32 = arith.constant 0 : i32
    %c0_i32_0 = arith.constant 0 : i32
    %c0_i32_1 = arith.constant 0 : i32
    return %c0_i32, %c0_i32_0 : i32, i32
  }
  func.func @transform_3(%arg0: i32) -> (i32, i32, i32) {
    %c0_i32 = arith.constant 0 : i32
    %c0_i32_0 = arith.constant 0 : i32
    %c0_i32_1 = arith.constant 0 : i32
    %c0_i32_2 = arith.constant 0 : i32
    return %c0_i32, %c0_i32_0, %c0_i32_1 : i32, i32, i32
  }
  func.func @transform_4(%arg0: i32) -> (i32, i32) {
    %c0_i32 = arith.constant 0 : i32
    %c0_i32_0 = arith.constant 0 : i32
    %c0_i32_1 = arith.constant 0 : i32
    return %c0_i32, %c0_i32_0 : i32, i32
  }
  func.func @transform_5(%arg0: i32) -> (i32, i32, i32) {
    %c0_i32 = arith.constant 0 : i32
    %c0_i32_0 = arith.constant 0 : i32
    %c0_i32_1 = arith.constant 0 : i32
    %c0_i32_2 = arith.constant 0 : i32
    return %c0_i32, %c0_i32_0, %c0_i32_1 : i32, i32, i32
  }
  func.func @transform_6(%arg0: i32) -> (i32, i32) {
    %c0_i32 = arith.constant 0 : i32
    %c0_i32_0 = arith.constant 0 : i32
    %c0_i32_1 = arith.constant 0 : i32
    return %c0_i32, %c0_i32_0 : i32, i32
  }
  func.func @transform_7(%arg0: i32) -> (i32, i32) {
    %c0_i32 = arith.constant 0 : i32
    %c0_i32_0 = arith.constant 0 : i32
    %c0_i32_1 = arith.constant 0 : i32
    return %c0_i32, %c0_i32_0 : i32, i32
  }
  func.func @transform_8(%arg0: i32) -> (i32, i32) {
    %c0_i32 = arith.constant 0 : i32
    %c0_i32_0 = arith.constant 0 : i32
    %c0_i32_1 = arith.constant 0 : i32
    return %c0_i32, %c0_i32_0 : i32, i32
  }
  func.func @transform_9(%arg0: i32) -> (i32, i32) {
    %c0_i32 = arith.constant 0 : i32
    %c0_i32_0 = arith.constant 0 : i32
    return %arg0, %c0_i32 : i32, i32
  }
}

</mosaic_0001>

<bundles_post_ra>
// kernel: forward.1
= control target key start
LH: loop header
LB: loop body
LE: loop exit
PB: predicated region body
PF: predicated region fallthrough
CT: control target
= control target key end

     0   :  { %14 = vsyncpa [#allocation4], 0  ;;  %s5944_s0 = inlined_call_operand.vmem [shape: bf16[192,168], index: 0, kind: input, shape index: {}]   ;;  %s5945_s1 = inlined_call_operand.vmem [shape: bf16[168,512], index: 1, kind: input, shape index: {}]   ;;  %s5946_s2 = inlined_call_operand.vmem [shape: f32[1,128], index: 2, kind: input, shape index: {}]   ;;  %s5947_s3 = inlined_call_operand.vmem [shape: bf16[6,128,512], index: 3, kind: input, shape index: {}]   ;;  %s5948_s4 = inlined_call_operand.vmem [shape: f32[1,128], index: 4, kind: input, shape index: {}]   ;;  %s5949_s5 = inlined_call_operand.vmem [shape: bf16[4,128,50], index: 5, kind: input, shape index: {}]   ;;  %s5950_s6 = inlined_call_operand.vmem [shape: f32[1,50], index: 6, kind: input, shape index: {}]   ;;  %s5951_s7 = inlined_call_operand.vmem [shape: bf16[50,10], index: 7, kind: input, shape index: {}]   ;;  %s5952_s8 = inlined_call_operand.vmem [shape: f32[1,10], index: 8, kind: input, shape index: {}]   ;;  %s5953_s9 = inlined_call_operand.hbm [shape: f32[16,10], index: 9, kind: output, shape index: {}]  }
   0x1   :  { %16 = vsyncpa [#allocation4 + $0x1], 0  ;;  %s4687_s30 = smov 0   ;;  %s4689_s10 = smov 0  }
   0x2   :  { %s4691_s11 = smov 0   ;;  %s4693_s12 = smov 0  }
   0x3 LB: > { %s4708_s13 = sadd.s32 4294967295, %s4631_s12   ;;  %s3463_s14 = sadd.s32 4294967294, %s4631_s12   ;;  %s4631_s12 = sphi %s4693_s12, %s5982_s12   ;;  %s4627_s11 = sphi %s4691_s11, %s5981_s11   ;;  %s4623_s10 = sphi %s4689_s10, %s5980_s10   ;;  %s4619_s30 = sphi %s4687_s30, %s5979_s30  }
   0x4   : > { %s4712_s15 = sadd.s32 1, %s4631_s12   ;;  %s223_s16 = sadd.s32 1, %s4627_s11 }
   0x5   : > { %s220_s17 = ssub.s32 %s4631_s12, %s4712_s15  ;;  %p233_p0 = scmp.ne.s32.totalorder %s4627_s11, %s4623_s10 }
   0x6   : > { %p221_p1 = scmp.eq.s32.totalorder %s220_s17, 0  ;;  %p234_p2 = scmp.eq.s32.totalorder %s4708_s13, 1 }
   0x7   : > { %p239_p3 = scmp.ne.s32.totalorder %s4623_s10, %s4619_s30  ;;  %p240_p4 = scmp.eq.s32.totalorder %s3463_s14, 1 }
   0x8   : > { %s4723_s18 = scalar_select %p221_p1, %s4627_s11, %s223_s16  }
   0x9   : > { %p4725_p5 = por %p234_p2, %p233_p0  ;;  %p4729_p6 = por %p240_p4, %p239_p3 }
   0xa   : > { %p3466_p7 = scmp.ge.s32.totalorder %s4631_s12, 1  ;;  %p292_p8 = scmp.lt.s32.totalorder %s4631_s12, 3 }
   0xc   : > { %p293_p9 = pnand %p3466_p7, %p292_p8 }
   0xe   : > { %296 = sbr.rel (%p293_p9) target bundleno = 1409 (0x581), region = 56 }
  0x13   : > { %v4161_v0 = vld [vmem:[%s5945_s1 + $0xe4] ss:$16 sps:$4 sm:$0xff]   ;;  %v4163_v1 = vld [vmem:[%s5945_s1 + $0xec] ss:$16 sps:$4 sm:$0xff]   ;;  %v4165_v2 = vld [vmem:[%s5945_s1 + $0xe0] ss:$16 sps:$4 sm:$0xff]  }
  0x14   : > { %687 = vmatprep.subr.bf16.mxu0 %v4161_v0  ;;  %v4166_v3 = vld [vmem:[%s5945_s1 + $0xe8] ss:$16 sps:$4 sm:$0xff]   ;;  %780 = vmatprep.subr.bf16.mxu1 %v4163_v1  ;;  %v4167_v4 = vld [vmem:[%s5945_s1 + $0xc4] ss:$16 sps:$4 sm:$0xff]   ;;  %v4169_v5 = vld [vmem:[%s5945_s1 + $0xcc] ss:$16 sps:$4 sm:$0xff]  }
  0x15   : > { %688 = vmatpush1.bf16.msra.mxu0 %v4165_v2  ;;  %781 = vmatpush1.bf16.msra.mxu1 %v4166_v3  ;;  %v4171_v6 = vld [vmem:[%s5945_s1 + $0xc0] ss:$16 sps:$4 sm:$0xff]   ;;  %v4172_v7 = vld [vmem:[%s5945_s1 + $0xc8] ss:$16 sps:$4 sm:$0xff]   ;;  %v4173_v8 = vld [vmem:[%s5945_s1 + $0xa4] ss:$16 sps:$4 sm:$0xff]  }
  0x16   : > { %689 = vmatprep.subr.bf16.mxu0 %v4167_v4  ;;  %782 = vmatprep.subr.bf16.mxu1 %v4169_v5  ;;  %v4175_v9 = vld [vmem:[%s5945_s1 + $0xac] ss:$16 sps:$4 sm:$0xff]   ;;  %v4177_v10 = vld [vmem:[%s5945_s1 + $0xa0] ss:$16 sps:$4 sm:$0xff]   ;;  %v4178_v11 = vld [vmem:[%s5945_s1 + $0xa8] ss:$16 sps:$4 sm:$0xff]  }
  0x17   : > { %v4179_v12 = vld [vmem:[%s5945_s1 + $0x84] ss:$16 sps:$4 sm:$0xff]   ;;  %v4181_v13 = vld [vmem:[%s5945_s1 + $0x8c] ss:$16 sps:$4 sm:$0xff]   ;;  %s329_s25 = smul.u32 12, %s4708_s13  ;;  %vm655_vm0 = vcmask 326656  }
  0x18   : > { %v4183_v14 = vld [vmem:[%s5945_s1 + $0x80] ss:$16 sps:$4 sm:$0xff]   ;;  %v4184_v15 = vld [vmem:[%s5945_s1 + $0x88] ss:$16 sps:$4 sm:$0xff]   ;;  %v4185_v16 = vld [vmem:[%s5945_s1 + $0x64] ss:$16 sps:$4 sm:$0xff]  }
  0x19   : > { %690 = vmatpush1.bf16.msra.mxu0 %v4171_v6  ;;  %783 = vmatpush1.bf16.msra.mxu1 %v4172_v7  ;;  %v4187_v17 = vld [vmem:[%s5945_s1 + $0x6c] ss:$16 sps:$4 sm:$0xff]   ;;  %p330_p10 = scmp.lt.s32.totalorder %s329_s25, 23  ;;  %v4189_v18 = vld [vmem:[%s5945_s1 + $0x60] ss:$16 sps:$4 sm:$0xff]   ;;  %vm674_vm1 = vcmask 1043456  }
  0x1a   : > { %691 = vmatprep.subr.bf16.mxu0 %v4173_v8  ;;  %784 = vmatprep.subr.bf16.mxu1 %v4175_v9  ;;  %v4190_v19 = vld [vmem:[%s5945_s1 + $0x68] ss:$16 sps:$4 sm:$0xff]   ;;  %v4191_v20 = vld [vmem:[%s5945_s1 + $0x44] ss:$16 sps:$4 sm:$0xff]   ;;  %v4193_v21 = vld [vmem:[%s5945_s1 + $0x4c] ss:$16 sps:$4 sm:$0xff]  }
  0x1b   : > { %s5984_s25 = smov (!%p330_p10, %s329_s25), 23  ;;  %v4195_v22 = vld [vmem:[%s5945_s1 + $0x40] ss:$16 sps:$4 sm:$0xff]   ;;  %v4196_v23 = vld [vmem:[%s5945_s1 + $0x48] ss:$16 sps:$4 sm:$0xff]   ;;  %vm4635_vm2 = vmmov 0  }
  0x1c   : > { %v4197_v24 = vld [vmem:[%s5945_s1 + $0x24] ss:$16 sps:$4 sm:$0xff]   ;;  %v4199_v25 = vld [vmem:[%s5945_s1 + $0x2c] ss:$16 sps:$4 sm:$0xff]   ;;  %s3985_s28 = sshll.u32 %s5984_s25, 3  ;;  %vm3332_vm3 = vcmask 1040384  }
  0x1d   : > { %692 = vmatpush1.bf16.msra.mxu0 %v4177_v10  ;;  %785 = vmatpush1.bf16.msra.mxu1 %v4178_v11  ;;  %v4201_v26 = vld [vmem:[%s5945_s1 + $0x20] ss:$16 sps:$4 sm:$0xff]   ;;  %v4202_v27 = vld [vmem:[%s5945_s1 + $0x28] ss:$16 sps:$4 sm:$0xff]   ;;  %v4203_v28 = vld [vmem:[%s5945_s1 + $0x4] ss:$16 sps:$4 sm:$0xff]   ;;  %s4832_s14 = scalar_lea.vmem %s5944_s0, %s3985_s28 }
  0x1e   : > { %693 = vmatprep.subr.bf16.mxu0 %v4179_v12  ;;  %786 = vmatprep.subr.bf16.mxu1 %v4181_v13  ;;  %v4205_v29 = vld [vmem:[%s5945_s1 + $0xc] ss:$16 sps:$4 sm:$0xff]   ;;  %v389_v30 = vld [vmem:[%s5945_s1 + $0x140] sm:$0xff]  ;;  %v4208_v33 = vld [vmem:[%s5945_s1 + $0x8] ss:$16 sps:$4 sm:$0xff]   ;;  %vm3328_vm4 = vcmask 408576  }
  0x1f   : > { %v390_v31 = vld [vmem:[%s5945_s1 + $0x148] sm:$0xff]  ;;  %v4207_v32 = vld [vmem:[%s5945_s1] ss:$16 sps:$4 sm:$0xff]   ;;  %v3523_v34 = vcombine.high %v389_v30, %v389_v30  ;;  %v3522_v37 = vcombine.low %v389_v30, %v389_v30  ;;  %v4213_v39 = vld [vmem:[%s5945_s1 + $0x124] ss:$16 sps:$4 sm:$0xff]   ;;  %v4633_v30 = vmov 0  }
  0x20   : > { %v4227_v35 = vld [vmem:[%s4832_s14 + $0x4] ss:$8 sps:$4 sm:$0xff]   ;;  %v3525_v36 = vcombine.high %v390_v31, %v390_v31  ;;  %v3524_v38 = vcombine.low %v390_v31, %v390_v31  ;;  %v4217_v43 = vld [vmem:[%s5945_s1 + $0x120] ss:$16 sps:$4 sm:$0xff]   ;;  %v4218_v44 = vld [vmem:[%s5945_s1 + $0x128] ss:$16 sps:$4 sm:$0xff]  }
  0x21   : > { %694 = vmatpush1.bf16.msra.mxu0 %v4183_v14  ;;  %787 = vmatpush1.bf16.msra.mxu1 %v4184_v15  ;;  %v676_v40 = vsel %vm674_vm1, %v3522_v37, 0  ;;  %v4215_v42 = vld [vmem:[%s5945_s1 + $0x12c] ss:$16 sps:$4 sm:$0xff]   ;;  %v4219_v45 = vld [vmem:[%s5945_s1 + $0x104] ss:$16 sps:$4 sm:$0xff]   ;;  %vm3376_vm5 = vcmask 80896  }
  0x22   : > { %695 = vmatprep.subr.bf16.mxu0 %v4185_v16  ;;  %788 = vmatprep.subr.bf16.mxu1 %v4187_v17  ;;  %v682_v41 = vsel %vm674_vm1, %v3524_v38, 0  ;;  %v4221_v46 = vld [vmem:[%s5945_s1 + $0x10c] ss:$16 sps:$4 sm:$0xff]   ;;  %v4223_v47 = vld [vmem:[%s5945_s1 + $0x100] ss:$16 sps:$4 sm:$0xff]   ;;  %s326_s29 = sand.u32 1, %s4623_s10  }
  0x23   : > { %3527 = vmatprep.mubr.msk.bf16.mxu0 %vm655_vm0, %v4227_v35  ;;  %3534 = vmatprep.mubr.msk.bf16.mxu1 %vm655_vm0, %v4227_v35  ;;  %v4224_v48 = vld [vmem:[%s5945_s1 + $0x108] ss:$16 sps:$4 sm:$0xff]   ;;  %v4245_v49 = vld [vmem:[%s5947_s3 + $0x1e4] ss:$16 sps:$4 sm:$0xff]   ;;  %v4248_v50 = vld [vmem:[%s5947_s3 + $0x1ec] ss:$16 sps:$4 sm:$0xff]  }
  0x24   : > { %v4225_v51 = vld [vmem:[%s4832_s14] ss:$8 sps:$4 sm:$0xff]   ;;  %v4228_v52 = vld [vmem:[%s4832_s14 + $0x14] ss:$8 sps:$4 sm:$0xff]   ;;  %v4230_v61 = vld [vmem:[%s4832_s14 + $0x10] ss:$8 sps:$4 sm:$0xff]  }
  0x25   : > { %696 = vmatpush1.bf16.msra.mxu0 %v4189_v18  ;;  %789 = vmatpush1.bf16.msra.mxu1 %v4190_v19  ;;  %v4243_v53 = vld [vmem:[%s5947_s3 + $0x1e0] ss:$16 sps:$4 sm:$0xff]   ;;  %v4246_v54 = vld [vmem:[%s5947_s3 + $0x1e8] ss:$16 sps:$4 sm:$0xff]   ;;  %v4251_v55 = vld [vmem:[%s5947_s3 + $0x1c4] ss:$16 sps:$4 sm:$0xff]  }
  0x26   : > { %697 = vmatprep.subr.bf16.mxu0 %v4191_v20  ;;  %790 = vmatprep.subr.bf16.mxu1 %v4193_v21  ;;  %v4254_v56 = vld [vmem:[%s5947_s3 + $0x1cc] ss:$16 sps:$4 sm:$0xff]   ;;  %v4249_v57 = vld [vmem:[%s5947_s3 + $0x1c0] ss:$16 sps:$4 sm:$0xff]   ;;  %v4252_v58 = vld [vmem:[%s5947_s3 + $0x1c8] ss:$16 sps:$4 sm:$0xff]  }
  0x27   : > { %v4257_v59 = vld [vmem:[%s5947_s3 + $0x1a4] ss:$16 sps:$4 sm:$0xff]   ;;  %v4260_v60 = vld [vmem:[%s5947_s3 + $0x1ac] ss:$16 sps:$4 sm:$0xff]   ;;  %v4255_v63 = vld [vmem:[%s5947_s3 + $0x1a0] ss:$16 sps:$4 sm:$0xff]  }
  0x28   : > { %v4231_v62 = vld [vmem:[%s4832_s14 + $0x24] ss:$8 sps:$4 sm:$0xff]   ;;  %v4258_v0 = vld [vmem:[%s5947_s3 + $0x1a8] ss:$16 sps:$4 sm:$0xff]   ;;  %v4261_v3 = vld [vmem:[%s5947_s3 + $0x180] ss:$16 sps:$4 sm:$0xff]  }
  0x29   : > { %698 = vmatpush1.bf16.msra.mxu0 %v4195_v22  ;;  %791 = vmatpush1.bf16.msra.mxu1 %v4196_v23  ;;  %v4263_v1 = vld [vmem:[%s5947_s3 + $0x184] ss:$16 sps:$4 sm:$0xff]   ;;  %v4266_v2 = vld [vmem:[%s5947_s3 + $0x18c] ss:$16 sps:$4 sm:$0xff]   ;;  %v4264_v4 = vld [vmem:[%s5947_s3 + $0x188] ss:$16 sps:$4 sm:$0xff]  }
  0x2a   : > { %699 = vmatprep.subr.bf16.mxu0 %v4197_v24  ;;  %792 = vmatprep.subr.bf16.mxu1 %v4199_v25  ;;  %v4233_v5 = vld [vmem:[%s4832_s14 + $0x20] ss:$8 sps:$4 sm:$0xff]   ;;  %v4234_v6 = vld [vmem:[%s4832_s14 + $0x34] ss:$8 sps:$4 sm:$0xff]   ;;  %v4236_v7 = vld [vmem:[%s4832_s14 + $0x30] ss:$8 sps:$4 sm:$0xff]  }
  0x2b   : > { %v4237_v8 = vld [vmem:[%s4832_s14 + $0x44] ss:$8 sps:$4 sm:$0xff]   ;;  %v4239_v9 = vld [vmem:[%s4832_s14 + $0x40] ss:$8 sps:$4 sm:$0xff]   ;;  %v4240_v10 = vld [vmem:[%s4832_s14 + $0x54] ss:$8 sps:$4 sm:$0xff]  }
  0x2c   : > { %v4242_v11 = vld [vmem:[%s4832_s14 + $0x50] ss:$8 sps:$4 sm:$0xff]   ;;  %v4269_v13 = vld [vmem:[%s5947_s3 + $0x164] ss:$16 sps:$4 sm:$0xff]   ;;  %v4272_v15 = vld [vmem:[%s5947_s3 + $0x16c] ss:$16 sps:$4 sm:$0xff]  }
  0x2d   : > { %700 = vmatpush1.bf16.msra.mxu0 %v4201_v26  ;;  %793 = vmatpush1.bf16.msra.mxu1 %v4202_v27  ;;  %v4267_v12 = vld [vmem:[%s5947_s3 + $0x160] ss:$16 sps:$4 sm:$0xff]   ;;  %v4270_v14 = vld [vmem:[%s5947_s3 + $0x168] ss:$16 sps:$4 sm:$0xff]   ;;  %v4275_v16 = vld [vmem:[%s5947_s3 + $0x144] ss:$16 sps:$4 sm:$0xff]  }
  0x2e   : > { %701 = vmatprep.subr.bf16.mxu0 %v4203_v28  ;;  %794 = vmatprep.subr.bf16.mxu1 %v4205_v29  ;;  %v4278_v17 = vld [vmem:[%s5947_s3 + $0x14c] ss:$16 sps:$4 sm:$0xff]   ;;  %v4273_v18 = vld [vmem:[%s5947_s3 + $0x140] ss:$16 sps:$4 sm:$0xff]   ;;  %v4276_v19 = vld [vmem:[%s5947_s3 + $0x148] ss:$16 sps:$4 sm:$0xff]  }
  0x2f   : > { %v4281_v20 = vld [vmem:[%s5947_s3 + $0x124] ss:$16 sps:$4 sm:$0xff]   ;;  %v4284_v21 = vld [vmem:[%s5947_s3 + $0x12c] ss:$16 sps:$4 sm:$0xff]   ;;  %v4279_v22 = vld [vmem:[%s5947_s3 + $0x120] ss:$16 sps:$4 sm:$0xff]  }
  0x30   : > { %v4282_v23 = vld [vmem:[%s5947_s3 + $0x128] ss:$16 sps:$4 sm:$0xff]   ;;  %v4287_v24 = vld [vmem:[%s5947_s3 + $0x104] ss:$16 sps:$4 sm:$0xff]   ;;  %v4290_v25 = vld [vmem:[%s5947_s3 + $0x10c] ss:$16 sps:$4 sm:$0xff]  }
  0x31   : > { %702 = vmatpush1.bf16.msra.mxu0 %v4207_v32  ;;  %795 = vmatpush1.bf16.msra.mxu1 %v4208_v33  ;;  %v4285_v26 = vld [vmem:[%s5947_s3 + $0x100] ss:$16 sps:$4 sm:$0xff]   ;;  %v4288_v27 = vld [vmem:[%s5947_s3 + $0x108] ss:$16 sps:$4 sm:$0xff]   ;;  %v4293_v28 = vld [vmem:[%s5947_s3 + $0xe4] ss:$16 sps:$4 sm:$0xff]  }
  0x32   : > { %3526 = vmatprep.subr.msk.bf16.mxu0 %vm674_vm1, %v3523_v34  ;;  %3533 = vmatprep.subr.msk.bf16.mxu1 %vm674_vm1, %v3525_v36  ;;  %v4296_v29 = vld [vmem:[%s5947_s3 + $0xec] ss:$16 sps:$4 sm:$0xff]   ;;  %s3467_s16 = sshll.u32 %s326_s29, 3  ;;  %s3982_s17 = sshll.u32 %s4708_s13, 7 }
  0x33   : > { %s328_s21 = scalar_lea.vmem [#allocation3], %s3467_s16  ;;  %s3402_s28 = scalar_lea.hbm %s5953_s9, %s3982_s17 }
  0x34   : > { %s3404_s22 = sshll.u32 %s328_s21, 4  ;;  %s3391_s14 = scalar_lea.sflag [#allocation4], %s326_s29  ;;  %s3405_s22 = int_to_ptr.vmem [resolvable:$true] %s3404_s22 }
  0x35   : > { %714 = vmatpush2.bf16.msra.mxu0 %v676_v40  ;;  %807 = vmatpush2.bf16.msra.mxu1 %v682_v41  ;;  %s4571_s25 = scalar_lea.vmem %s3405_s22, 128  ;;  %s4636_s26 = smov [#allocation3]  }
  0x36   : > { %715 = vmatprep.subr.bf16.mxu0 %v4213_v39  ;;  %808 = vmatprep.subr.bf16.mxu1 %v4215_v42  ;;  %p4572_p11 = scmp.ne.s32.totalorder %s3405_s22, %s4571_s25  ;;  %s4575_s27 = sshll.u32 %s4636_s26, 4  ;;  %s4576_s27 = int_to_ptr.vmem [resolvable:$false] %s4575_s27 }
  0x37   : > { %s4577_s13 = scalar_lea.vmem %s4576_s27, 256  ;;  %p4578_p0 = scmp.lt.s32.totalorder %s3405_s22, %s4576_s27 }
  0x38   : > { %p4573_p12 = pnand %p4572_p11, %p4725_p5  ;;  %p4579_p1 = scmp.lt.s32.totalorder %s4577_s13, %s4571_s25 }
  0x39   : > { %716 = vmatpush2.bf16.msra.mxu0 %v4217_v43  ;;  %809 = vmatpush2.bf16.msra.mxu1 %v4218_v44 }
  0x3a   : > { %717 = vmatprep.subr.bf16.mxu0 %v4219_v45  ;;  %810 = vmatprep.subr.bf16.mxu1 %v4221_v46  ;;  %p4574_p13 = pneg %p4573_p12  ;;  %p4580_p2 = por %p4579_p1, %p4578_p0 }
  0x3c   : > { %p4581_p3 = pnand %p4580_p2, %p4574_p13 }
  0x3d   : > { %718 = vmatpush2.bf16.msra.mxu0 %v4223_v47  ;;  %811 = vmatpush2.bf16.msra.mxu1 %v4224_v48 }
  0x3e   : > { %1189 = vmatprep.subr.bf16.mxu0 %v4245_v49  ;;  %1242 = vmatprep.subr.bf16.mxu1 %v4248_v50 }
  0x40   : > { %720 = vmatmul.mubr.bf16.vlgmr.msra.gmra.mxu0 %v4225_v51  ;;  %813 = vmatmul.mubr.bf16.vlgmr.msra.gmra.mxu1 %v4225_v51 }
  0x41   : > { %3528 = vmatprep.mubr.msk.bf16.mxu0 %vm655_vm0, %v4228_v52  ;;  %3535 = vmatprep.mubr.msk.bf16.mxu1 %vm655_vm0, %v4228_v52  ;;  %v5014_v52 = vld [vmem:[%s5946_s2] ss:$0 sm:$0xff] }
  0x42   : > { %1190 = vmatpush1.bf16.msra.mxu0 %v4243_v53  ;;  %1243 = vmatpush1.bf16.msra.mxu1 %v4246_v54 }
  0x43   : > { %1191 = vmatprep.subr.bf16.mxu0 %v4251_v55  ;;  %1244 = vmatprep.subr.bf16.mxu1 %v4254_v56 }
  0x46   : > { %1192 = vmatpush1.bf16.msra.mxu0 %v4249_v57  ;;  %1245 = vmatpush1.bf16.msra.mxu1 %v4252_v58 }
  0x47   : > { %1193 = vmatprep.subr.bf16.mxu0 %v4257_v59  ;;  %1246 = vmatprep.subr.bf16.mxu1 %v4260_v60 }
  0x48   : > { %730 = vmatmul.mubr.bf16.gmra.mxu0 %v4230_v61  ;;  %823 = vmatmul.mubr.bf16.gmra.mxu1 %v4230_v61 }
  0x49   : > { %3529 = vmatprep.mubr.msk.bf16.mxu0 %vm655_vm0, %v4231_v62  ;;  %3536 = vmatprep.mubr.msk.bf16.mxu1 %vm655_vm0, %v4231_v62 }
  0x4a   : > { %1194 = vmatpush1.bf16.msra.mxu0 %v4255_v63  ;;  %1247 = vmatpush1.bf16.msra.mxu1 %v4258_v0 }
  0x4b   : > { %1195 = vmatprep.subr.bf16.mxu0 %v4263_v1  ;;  %1248 = vmatprep.subr.bf16.mxu1 %v4266_v2  ;;  %v4291_v2 = vld [vmem:[%s5947_s3 + $0xe0] ss:$16 sps:$4 sm:$0xff]  }
  0x4e   : > { %1196 = vmatpush1.bf16.msra.mxu0 %v4261_v3  ;;  %1249 = vmatpush1.bf16.msra.mxu1 %v4264_v4  ;;  %v4294_v3 = vld [vmem:[%s5947_s3 + $0xe8] ss:$16 sps:$4 sm:$0xff]  }
  0x4f   : > { %1197 = vmatprep.subr.bf16.mxu0 %v4269_v13  ;;  %1250 = vmatprep.subr.bf16.mxu1 %v4272_v15  ;;  %v4300_v15 = vld [vmem:[%s5947_s3 + $0xc8] ss:$16 sps:$4 sm:$0xff]  }
  0x50   : > { %740 = vmatmul.mubr.bf16.gmra.mxu0 %v4233_v5  ;;  %833 = vmatmul.mubr.bf16.gmra.mxu1 %v4233_v5 }
  0x51   : > { %3530 = vmatprep.mubr.msk.bf16.mxu0 %vm655_vm0, %v4234_v6  ;;  %3537 = vmatprep.mubr.msk.bf16.mxu1 %vm655_vm0, %v4234_v6 }
  0x52   : > { %1198 = vmatpush1.bf16.msra.mxu0 %v4267_v12  ;;  %1251 = vmatpush1.bf16.msra.mxu1 %v4270_v14  ;;  %v4297_v14 = vld [vmem:[%s5947_s3 + $0xc0] ss:$16 sps:$4 sm:$0xff]  }
  0x53   : > { %1199 = vmatprep.subr.bf16.mxu0 %v4275_v16  ;;  %1252 = vmatprep.subr.bf16.mxu1 %v4278_v17  ;;  %v4305_v17 = vld [vmem:[%s5947_s3 + $0xa4] ss:$16 sps:$4 sm:$0xff]  }
  0x56   : > { %1200 = vmatpush1.bf16.msra.mxu0 %v4273_v18  ;;  %1253 = vmatpush1.bf16.msra.mxu1 %v4276_v19 }
  0x57   : > { %1201 = vmatprep.subr.bf16.mxu0 %v4281_v20  ;;  %1254 = vmatprep.subr.bf16.mxu1 %v4284_v21  ;;  %v4308_v20 = vld [vmem:[%s5947_s3 + $0xac] ss:$16 sps:$4 sm:$0xff]  }
  0x58   : > { %750 = vmatmul.mubr.bf16.gmra.mxu0 %v4236_v7  ;;  %843 = vmatmul.mubr.bf16.gmra.mxu1 %v4236_v7  ;;  %v4299_v7 = vld [vmem:[%s5947_s3 + $0xc4] ss:$16 sps:$4 sm:$0xff]  }
  0x59   : > { %3531 = vmatprep.mubr.msk.bf16.mxu0 %vm655_vm0, %v4237_v8  ;;  %3538 = vmatprep.mubr.msk.bf16.mxu1 %vm655_vm0, %v4237_v8 }
  0x5a   : > { %1202 = vmatpush1.bf16.msra.mxu0 %v4279_v22  ;;  %1255 = vmatpush1.bf16.msra.mxu1 %v4282_v23 }
  0x5b   : > { %1203 = vmatprep.subr.bf16.mxu0 %v4287_v24  ;;  %1256 = vmatprep.subr.bf16.mxu1 %v4290_v25  ;;  %v4303_v24 = vld [vmem:[%s5947_s3 + $0xa0] ss:$16 sps:$4 sm:$0xff]   ;;  %v4306_v25 = vld [vmem:[%s5947_s3 + $0xa8] ss:$16 sps:$4 sm:$0xff]  }
  0x5e   : > { %1204 = vmatpush1.bf16.msra.mxu0 %v4285_v26  ;;  %1257 = vmatpush1.bf16.msra.mxu1 %v4288_v27 }
  0x5f   : > { %1455 = vmatprep.subr.bf16.mxu0 %v4293_v28  ;;  %1508 = vmatprep.subr.bf16.mxu1 %v4296_v29  ;;  %v4311_v29 = vld [vmem:[%s5947_s3 + $0x84] ss:$16 sps:$4 sm:$0xff]  }
  0x60   : > { %760 = vmatmul.mubr.bf16.gmra.mxu0 %v4239_v9  ;;  %853 = vmatmul.mubr.bf16.gmra.mxu1 %v4239_v9 }
  0x61   : > { %3532 = vmatprep.mubr.msk.bf16.mxu0 %vm655_vm0, %v4240_v10  ;;  %3539 = vmatprep.mubr.msk.bf16.mxu1 %vm655_vm0, %v4240_v10  ;;  %v4302_v10 = vld [vmem:[%s5947_s3 + $0xcc] ss:$16 sps:$4 sm:$0xff]  }
  0x68   : > { %770 = vmatmul.mubr.bf16.gmra.mxu0 %v4242_v11  ;;  %863 = vmatmul.mubr.bf16.gmra.mxu1 %v4242_v11 }
  0x69   : > { %1221 = vmatprep.mubr.bf16.mxu0 %v4633_v30  ;;  %1274 = vmatprep.mubr.bf16.mxu1 %v4633_v30 }
 0x100   : > { %v4995_v31 = vpop.f32.mrf.mxu0  ;;  %v4997_v32 = vpop.f32.mrf.mxu1 }
 0x102   : > { %v4999_v33 = vpop.f32.mrf.mxu0  ;;  %v5001_v34 = vpop.f32.mrf.mxu1 }
 0x104   : > { %v725_v35 = vpop.f32.mrf.mxu0  ;;  %v818_v36 = vpop.f32.mrf.mxu1 }
 0x106   : > { %v727_v37 = vpop.f32.mrf.mxu0  ;;  %v820_v38 = vpop.f32.mrf.mxu1 }
 0x107   : > { %v874_v41 = vmax.f32 %v725_v35, %v727_v37  ;;  %v886_v42 = vmax.f32 %v818_v36, %v820_v38  ;;  %v4314_v37 = vld [vmem:[%s5947_s3 + $0x8c] ss:$16 sps:$4 sm:$0xff]  }
 0x108   : > { %v5003_v39 = vpop.f32.mrf.mxu0  ;;  %v5005_v40 = vpop.f32.mrf.mxu1 }
 0x109   : > { %v898_v47 = vmax.f32 %v874_v41, %v886_v42 }
 0x10a   : > { %v5007_v43 = vpop.f32.mrf.mxu0  ;;  %v5009_v44 = vpop.f32.mrf.mxu1 }
 0x10b   : > { %v917_v55 = vadd.f32 %v5014_v52, %v898_v47 }
 0x10c   : > { %v735_v45 = vpop.f32.mrf.mxu0  ;;  %v828_v46 = vpop.f32.mrf.mxu1 }
 0x10d   : > { %v929_v62 = vmax.f32 %v917_v55, 0.0 }
 0x10e   : > { %v737_v48 = vpop.f32.mrf.mxu0  ;;  %v830_v49 = vpop.f32.mrf.mxu1 }
 0x10f   : > { %v876_v50 = vmax.f32 %v735_v45, %v737_v48  ;;  %v888_v51 = vmax.f32 %v828_v46, %v830_v49  ;;  %v4309_v45 = vld [vmem:[%s5947_s3 + $0x80] ss:$16 sps:$4 sm:$0xff]   ;;  %v4312_v46 = vld [vmem:[%s5947_s3 + $0x88] ss:$16 sps:$4 sm:$0xff]   ;;  %v4317_v48 = vld [vmem:[%s5947_s3 + $0x64] ss:$16 sps:$4 sm:$0xff]  }
 0x110   : > { %v5016_v53 = vpop.f32.mrf.mxu0  ;;  %v5018_v54 = vpop.f32.mrf.mxu1 }
 0x111   : > { %v900_v56 = vmax.f32 %v876_v50, %v888_v51  ;;  %v4320_v51 = vld [vmem:[%s5947_s3 + $0x6c] ss:$16 sps:$4 sm:$0xff]  }
 0x112   : > { %v5021_v57 = vpop.f32.mrf.mxu0  ;;  %v5023_v58 = vpop.f32.mrf.mxu1 }
 0x113   : > { %v919_v59 = vadd.f32 %v5014_v52, %v900_v56 }
 0x114   : > { %v745_v60 = vpop.f32.mrf.mxu0  ;;  %v838_v61 = vpop.f32.mrf.mxu1 }
 0x115   : > { %v931_v63 = vmax.f32 %v919_v59, 0.0 }
 0x116   : > { %v747_v0 = vpop.f32.mrf.mxu0  ;;  %v840_v1 = vpop.f32.mrf.mxu1 }
 0x117   : > { %v994_v4 = vpack.c.bf16 %v931_v63, %v929_v62  ;;  %v878_v5 = vmax.f32 %v745_v60, %v747_v0  ;;  %v890_v6 = vmax.f32 %v838_v61, %v840_v1  ;;  %v875_v60 = vmax.f32 %v5003_v39, %v5007_v43  ;;  %v4315_v0 = vld [vmem:[%s5947_s3 + $0x60] ss:$16 sps:$4 sm:$0xff]   ;;  %v4318_v1 = vld [vmem:[%s5947_s3 + $0x68] ss:$16 sps:$4 sm:$0xff]  }
 0x118   : > { %v5035_v8 = vpop.f32.mrf.mxu0  ;;  %v5037_v9 = vpop.f32.mrf.mxu1  ;;  %v887_v61 = vmax.f32 %v5005_v40, %v5009_v44  ;;  %v4323_v40 = vld [vmem:[%s5947_s3 + $0x44] ss:$16 sps:$4 sm:$0xff]   ;;  %v4326_v44 = vld [vmem:[%s5947_s3 + $0x4c] ss:$16 sps:$4 sm:$0xff]  }
 0x119   : > { %v902_v11 = vmax.f32 %v878_v5, %v890_v6  ;;  %1222 = vmatmul.mubr.bf16.vlgmr.msra.gmra.mxu0 %v994_v4  ;;  %1275 = vmatmul.mubr.bf16.vlgmr.msra.gmra.mxu1 %v994_v4  ;;  %v885_v4 = vmax.f32 %v4997_v32, %v5001_v34 }
 0x11a   : > { %1456 = vmatpush1.bf16.msra.mxu0 %v4291_v2  ;;  %1509 = vmatpush1.bf16.msra.mxu1 %v4294_v3  ;;  %v5042_v12 = vpop.f32.mrf.mxu0  ;;  %v5044_v13 = vpop.f32.mrf.mxu1  ;;  %v873_v3 = vmax.f32 %v4995_v31, %v4999_v33  ;;  %v4324_v31 = vld [vmem:[%s5947_s3 + $0x48] ss:$16 sps:$4 sm:$0xff]  }
 0x11b   : > { %v921_v16 = vadd.f32 %v5014_v52, %v902_v11  ;;  %1457 = vmatprep.subr.bf16.mxu0 %v4299_v7  ;;  %1510 = vmatprep.subr.bf16.mxu1 %v4302_v10  ;;  %v899_v11 = vmax.f32 %v875_v60, %v887_v61 }
 0x11c   : > { %v755_v18 = vpop.f32.mrf.mxu0  ;;  %v848_v19 = vpop.f32.mrf.mxu1  ;;  %1231 = vmatprep.mubr.bf16.mxu0 %v4633_v30  ;;  %1284 = vmatprep.mubr.bf16.mxu1 %v4633_v30 }
 0x11d   : > { %v933_v21 = vmax.f32 %v921_v16, 0.0  ;;  %v4332_v16 = vld [vmem:[%s5947_s3 + $0x2c] ss:$16 sps:$4 sm:$0xff]  }
 0x11e   : > { %1458 = vmatpush1.bf16.msra.mxu0 %v4297_v14  ;;  %1511 = vmatpush1.bf16.msra.mxu1 %v4300_v15  ;;  %v757_v22 = vpop.f32.mrf.mxu0  ;;  %v850_v23 = vpop.f32.mrf.mxu1  ;;  %v4321_v14 = vld [vmem:[%s5947_s3 + $0x40] ss:$16 sps:$4 sm:$0xff]   ;;  %v4329_v15 = vld [vmem:[%s5947_s3 + $0x24] ss:$16 sps:$4 sm:$0xff]  }
 0x11f   : > { %v5067_v26 = vpack.c.bf16 %v933_v21, %v931_v63  ;;  %v880_v27 = vmax.f32 %v755_v18, %v757_v22  ;;  %v892_v28 = vmax.f32 %v848_v19, %v850_v23  ;;  %1459 = vmatprep.subr.bf16.mxu0 %v4305_v17  ;;  %1512 = vmatprep.subr.bf16.mxu1 %v4308_v20 }
 0x120   : > { %v761_v35 = vpop.f32.mrf.mxu0  ;;  %v854_v36 = vpop.f32.mrf.mxu1  ;;  %v897_v19 = vmax.f32 %v873_v3, %v885_v4  ;;  %v4345_v3 = vld [vmem:[%s5947_s3 + $0x2c0] ss:$16 sps:$4 sm:$0xff]   ;;  %v4348_v4 = vld [vmem:[%s5947_s3 + $0x2c8] ss:$16 sps:$4 sm:$0xff]  }
 0x121   : > { %v904_v38 = vmax.f32 %v880_v27, %v892_v28  ;;  %v879_v27 = vmax.f32 %v5035_v8, %v5042_v12  ;;  %v891_v28 = vmax.f32 %v5037_v9, %v5044_v13  ;;  %v4335_v8 = vld [vmem:[%s5947_s3 + $0x4] ss:$16 sps:$4 sm:$0xff]   ;;  %v4338_v9 = vld [vmem:[%s5947_s3 + $0xc] ss:$16 sps:$4 sm:$0xff]  }
 0x122   : > { %1460 = vmatpush1.bf16.msra.mxu0 %v4303_v24  ;;  %1513 = vmatpush1.bf16.msra.mxu1 %v4306_v25  ;;  %v763_v41 = vpop.f32.mrf.mxu0  ;;  %v856_v42 = vpop.f32.mrf.mxu1  ;;  %v5139_v25 = vadd.f32 %v5014_v52, %v899_v11  ;;  %v4354_v11 = vld [vmem:[%s5947_s3 + $0x2a8] ss:$16 sps:$4 sm:$0xff]  }
 0x123   : > { %v5082_v47 = vadd.f32 %v5014_v52, %v904_v38  ;;  %1461 = vmatprep.subr.bf16.mxu0 %v4311_v29  ;;  %1514 = vmatprep.subr.bf16.mxu1 %v4314_v37  ;;  %v881_v56 = vmax.f32 %v761_v35, %v763_v41  ;;  %v893_v59 = vmax.f32 %v854_v36, %v856_v42  ;;  %v4327_v29 = vld [vmem:[%s5947_s3 + $0x20] ss:$16 sps:$4 sm:$0xff]   ;;  %v4330_v35 = vld [vmem:[%s5947_s3 + $0x28] ss:$16 sps:$4 sm:$0xff]  }
 0x124   : > { %v765_v49 = vpop.f32.mrf.mxu0  ;;  %v858_v50 = vpop.f32.mrf.mxu1  ;;  %v916_v41 = vadd.f32 %v5014_v52, %v897_v19  ;;  %v877_v42 = vmax.f32 %v5016_v53, %v5021_v57  ;;  %v4336_v53 = vld [vmem:[%s5947_s3 + $0x8] ss:$16 sps:$4 sm:$0xff]   ;;  %v930_v57 = vmax.f32 %v5139_v25, 0.0  ;;  %v4371_v19 = vld [vmem:[%s5947_s3 + $0x244] ss:$16 sps:$4 sm:$0xff]  }
 0x125   : > { %v935_v55 = vmax.f32 %v5082_v47, 0.0  ;;  %v905_v7 = vmax.f32 %v881_v56, %v893_v59  ;;  %v903_v47 = vmax.f32 %v879_v27, %v891_v28  ;;  %v4380_v27 = vld [vmem:[%s5947_s3 + $0x22c] ss:$16 sps:$4 sm:$0xff]   ;;  %v4375_v28 = vld [vmem:[%s5947_s3 + $0x220] ss:$16 sps:$4 sm:$0xff]  }
 0x126   : > { %1462 = vmatpush1.bf16.msra.mxu0 %v4309_v45  ;;  %1515 = vmatpush1.bf16.msra.mxu1 %v4312_v46  ;;  %v767_v62 = vpop.f32.mrf.mxu0  ;;  %v860_v63 = vpop.f32.mrf.mxu1  ;;  %v889_v46 = vmax.f32 %v5018_v54, %v5023_v58  ;;  %v4341_v54 = vld [vmem:[%s5947_s3 + $0x2e4] ss:$16 sps:$4 sm:$0xff]   ;;  %v4344_v58 = vld [vmem:[%s5947_s3 + $0x2ec] ss:$16 sps:$4 sm:$0xff]   ;;  %v928_v59 = vmax.f32 %v916_v41, 0.0 }
 0x127   : > { %v5103_v2 = vpack.c.bf16 %v935_v55, %v933_v21  ;;  %v882_v39 = vmax.f32 %v765_v49, %v767_v62  ;;  %v894_v43 = vmax.f32 %v858_v50, %v860_v63  ;;  %1463 = vmatprep.subr.bf16.mxu0 %v4317_v48  ;;  %1516 = vmatprep.subr.bf16.mxu1 %v4320_v51  ;;  %v4333_v51 = vld [vmem:[%s5947_s3] ss:$16 sps:$4 sm:$0xff]   ;;  %v4342_v63 = vld [vmem:[%s5947_s3 + $0x2e8] ss:$16 sps:$4 sm:$0xff]  }
 0x128   : > { %v771_v5 = vpop.f32.mrf.mxu0  ;;  %v864_v6 = vpop.f32.mrf.mxu1  ;;  %v5135_v22 = vadd.f32 %v5014_v52, %v905_v7  ;;  %v901_v60 = vmax.f32 %v877_v42, %v889_v46  ;;  %v4339_v62 = vld [vmem:[%s5947_s3 + $0x2e0] ss:$16 sps:$4 sm:$0xff]   ;;  %v4395_v42 = vld [vmem:[%s5947_s3 + $0x3c4] ss:$16 sps:$4 sm:$0xff]   ;;  %v4398_v46 = vld [vmem:[%s5947_s3 + $0x3cc] ss:$16 sps:$4 sm:$0xff]  }
 0x129   : > { %v906_v10 = vmax.f32 %v882_v39, %v894_v43  ;;  %1232 = vmatmul.mubr.bf16.gmra.mxu0 %v5103_v2  ;;  %1285 = vmatmul.mubr.bf16.gmra.mxu1 %v5103_v2  ;;  %v4347_v39 = vld [vmem:[%s5947_s3 + $0x2c4] ss:$16 sps:$4 sm:$0xff]   ;;  %v4350_v43 = vld [vmem:[%s5947_s3 + $0x2cc] ss:$16 sps:$4 sm:$0xff]   ;;  %v4396_v25 = vld [vmem:[%s5947_s3 + $0x3c8] ss:$16 sps:$4 sm:$0xff]  }
 0x12a   : > { %1464 = vmatpush1.bf16.msra.mxu0 %v4315_v0  ;;  %1517 = vmatpush1.bf16.msra.mxu1 %v4318_v1  ;;  %v773_v32 = vpop.f32.mrf.mxu0  ;;  %v866_v33 = vpop.f32.mrf.mxu1  ;;  %v936_v48 = vmax.f32 %v5135_v22, 0.0  ;;  %v956_v0 = vpack.c.bf16 %v930_v57, %v928_v59  ;;  %v5195_v1 = vadd.f32 %v5014_v52, %v903_v47  ;;  %v4408_v22 = vld [vmem:[%s5947_s3 + $0x388] ss:$16 sps:$4 sm:$0xff]   ;;  %v4416_v59 = vld [vmem:[%s5947_s3 + $0x36c] ss:$16 sps:$4 sm:$0xff]  }
 0x12b   : > { %v5124_v34 = vadd.f32 %v5014_v52, %v906_v10  ;;  %1465 = vmatprep.subr.bf16.mxu0 %v4323_v40  ;;  %1518 = vmatprep.subr.bf16.mxu1 %v4326_v44  ;;  %v883_v17 = vmax.f32 %v771_v5, %v773_v32  ;;  %v895_v18 = vmax.f32 %v864_v6, %v866_v33  ;;  %v4356_v6 = vld [vmem:[%s5947_s3 + $0x2ac] ss:$16 sps:$4 sm:$0xff]   ;;  %v4351_v10 = vld [vmem:[%s5947_s3 + $0x2a0] ss:$16 sps:$4 sm:$0xff]  }
 0x12c   : > { %1487 = vmatprep.mubr.bf16.mxu0 %v4633_v30  ;;  %1540 = vmatprep.mubr.bf16.mxu1 %v4633_v30  ;;  %v775_v20 = vpop.f32.mrf.mxu0  ;;  %v868_v21 = vpop.f32.mrf.mxu1  ;;  %v5206_v44 = vadd.f32 %v5014_v52, %v901_v60  ;;  %v934_v5 = vmax.f32 %v5195_v1, 0.0  ;;  %v4362_v32 = vld [vmem:[%s5947_s3 + $0x28c] ss:$16 sps:$4 sm:$0xff]   ;;  %v4357_v33 = vld [vmem:[%s5947_s3 + $0x280] ss:$16 sps:$4 sm:$0xff]  }
 0x12d   : > { %v937_v23 = vmax.f32 %v5124_v34, 0.0  ;;  %v907_v24 = vmax.f32 %v883_v17, %v895_v18  ;;  %v4360_v34 = vld [vmem:[%s5947_s3 + $0x288] ss:$16 sps:$4 sm:$0xff]   ;;  %v4363_v17 = vld [vmem:[%s5947_s3 + $0x260] ss:$16 sps:$4 sm:$0xff]  }
 0x12e   : > { %1466 = vmatpush1.bf16.msra.mxu0 %v4321_v14  ;;  %1519 = vmatpush1.bf16.msra.mxu1 %v4324_v31  ;;  %v777_v36 = vpop.f32.mrf.mxu0  ;;  %v870_v37 = vpop.f32.mrf.mxu1  ;;  %v932_v7 = vmax.f32 %v5206_v44, 0.0  ;;  %v4359_v31 = vld [vmem:[%s5947_s3 + $0x284] ss:$16 sps:$4 sm:$0xff]   ;;  %v4366_v18 = vld [vmem:[%s5947_s3 + $0x268] ss:$16 sps:$4 sm:$0xff]   ;;  %v1563_v47 = vpack.c.bf16 %v936_v48, %v934_v5 }
 0x12f   : > { %1467 = vmatprep.subr.bf16.mxu0 %v4329_v15  ;;  %1520 = vmatprep.subr.bf16.mxu1 %v4332_v16  ;;  %v926_v12 = vadd.f32 %v5014_v52, %v907_v24  ;;  %v884_v13 = vmax.f32 %v775_v20, %v777_v36  ;;  %v896_v38 = vmax.f32 %v868_v21, %v870_v37  ;;  %v4365_v15 = vld [vmem:[%s5947_s3 + $0x264] ss:$16 sps:$4 sm:$0xff]   ;;  %v4368_v16 = vld [vmem:[%s5947_s3 + $0x26c] ss:$16 sps:$4 sm:$0xff]   ;;  %v4369_v21 = vld [vmem:[%s5947_s3 + $0x240] ss:$16 sps:$4 sm:$0xff]  }
 0x130   : > { %v5163_v45 = vpack.c.bf16 %v937_v23, %v935_v55  ;;  %v5232_v14 = vpack.c.bf16 %v934_v5, %v932_v7  ;;  %v4374_v20 = vld [vmem:[%s5947_s3 + $0x24c] ss:$16 sps:$4 sm:$0xff]   ;;  %v4377_v24 = vld [vmem:[%s5947_s3 + $0x224] ss:$16 sps:$4 sm:$0xff]   ;;  %v4381_v37 = vld [vmem:[%s5947_s3 + $0x200] ss:$16 sps:$4 sm:$0xff]   ;;  %v1562_v41 = vpack.c.bf16 %v932_v7, %v930_v57 }
 0x131   : > { %v938_v49 = vmax.f32 %v926_v12, 0.0  ;;  %v908_v50 = vmax.f32 %v884_v13, %v896_v38  ;;  %v4386_v36 = vld [vmem:[%s5947_s3 + $0x20c] ss:$16 sps:$4 sm:$0xff]   ;;  %v4387_v13 = vld [vmem:[%s5947_s3 + $0x3e0] ss:$16 sps:$4 sm:$0xff]  }
 0x132   : > { %1468 = vmatpush1.bf16.msra.mxu0 %v4327_v29  ;;  %1521 = vmatpush1.bf16.msra.mxu1 %v4330_v35  ;;  %v4378_v29 = vld [vmem:[%s5947_s3 + $0x228] ss:$16 sps:$4 sm:$0xff]   ;;  %v4383_v35 = vld [vmem:[%s5947_s3 + $0x204] ss:$16 sps:$4 sm:$0xff]   ;;  %v4392_v12 = vld [vmem:[%s5947_s3 + $0x3ec] ss:$16 sps:$4 sm:$0xff]  }
 0x133   : > { %1469 = vmatprep.subr.bf16.mxu0 %v4335_v8  ;;  %1522 = vmatprep.subr.bf16.mxu1 %v4338_v9  ;;  %v927_v55 = vadd.f32 %v5014_v52, %v908_v50  ;;  %v5184_v56 = vpack.c.bf16 %v938_v49, %v936_v48  ;;  %v4353_v52 = vld [vmem:[%s5947_s3 + $0x2a4] ss:$16 sps:$4 sm:$0xff]   ;;  %v4384_v8 = vld [vmem:[%s5947_s3 + $0x208] ss:$16 sps:$4 sm:$0xff]   ;;  %v4393_v49 = vld [vmem:[%s5947_s3 + $0x3c0] ss:$16 sps:$4 sm:$0xff]  }
 0x134   : > { %v4389_v9 = vld [vmem:[%s5947_s3 + $0x3e4] ss:$16 sps:$4 sm:$0xff]   ;;  %v4390_v38 = vld [vmem:[%s5947_s3 + $0x3e8] ss:$16 sps:$4 sm:$0xff]   ;;  %v4411_v60 = vld [vmem:[%s5947_s3 + $0x360] ss:$16 sps:$4 sm:$0xff]  }
 0x135   : > { %v939_v61 = vmax.f32 %v927_v55, 0.0  ;;  %v4401_v50 = vld [vmem:[%s5947_s3 + $0x3a4] ss:$16 sps:$4 sm:$0xff]   ;;  %v4402_v57 = vld [vmem:[%s5947_s3 + $0x3a8] ss:$16 sps:$4 sm:$0xff]  }
 0x136   : > { %1470 = vmatpush1.bf16.msra.mxu0 %v4333_v51  ;;  %1523 = vmatpush1.bf16.msra.mxu1 %v4336_v53  ;;  %v4404_v51 = vld [vmem:[%s5947_s3 + $0x3ac] ss:$16 sps:$4 sm:$0xff]   ;;  %v4399_v53 = vld [vmem:[%s5947_s3 + $0x3a0] ss:$16 sps:$4 sm:$0xff]   ;;  %v4413_v48 = vld [vmem:[%s5947_s3 + $0x364] ss:$16 sps:$4 sm:$0xff]  }
 0x137   : > { %1757 = vmatprep.subr.bf16.mxu0 %v4341_v54  ;;  %1810 = vmatprep.subr.bf16.mxu1 %v4344_v58  ;;  %v5203_v40 = vpack.c.bf16 %v939_v61, %v937_v23  ;;  %v4372_v23 = vld [vmem:[%s5947_s3 + $0x248] ss:$16 sps:$4 sm:$0xff]   ;;  %v4407_v54 = vld [vmem:[%s5947_s3 + $0x384] ss:$16 sps:$4 sm:$0xff]   ;;  %v4410_v58 = vld [vmem:[%s5947_s3 + $0x38c] ss:$16 sps:$4 sm:$0xff]  }
 0x138   : > { %v4405_v55 = vld [vmem:[%s5947_s3 + $0x380] ss:$16 sps:$4 sm:$0xff]   ;;  %v4414_v61 = vld [vmem:[%s5947_s3 + $0x368] ss:$16 sps:$4 sm:$0xff]   ;;  %v4434_v5 = vld [vmem:[%s5947_s3 + $0x30c] ss:$16 sps:$4 sm:$0xff]  }
 0x139   : > { %1488 = vmatmul.mubr.bf16.vlgmr.msra.gmra.mxu0 %v956_v0  ;;  %1541 = vmatmul.mubr.bf16.vlgmr.msra.gmra.mxu1 %v956_v0  ;;  %v4417_v0 = vld [vmem:[%s5947_s3 + $0x340] ss:$16 sps:$4 sm:$0xff]   ;;  %v4420_v1 = vld [vmem:[%s5947_s3 + $0x348] ss:$16 sps:$4 sm:$0xff]   ;;  %v4437_v7 = vld [vmem:[%s5947_s3 + $0x4e4] ss:$16 sps:$4 sm:$0xff]  }
 0x13a   : > { %1758 = vmatpush1.bf16.msra.mxu0 %v4339_v62  ;;  %1811 = vmatpush1.bf16.msra.mxu1 %v4342_v63  ;;  %v4419_v62 = vld [vmem:[%s5947_s3 + $0x344] ss:$16 sps:$4 sm:$0xff]   ;;  %v4422_v63 = vld [vmem:[%s5947_s3 + $0x34c] ss:$16 sps:$4 sm:$0xff]   ;;  %v4423_v44 = vld [vmem:[%s5947_s3 + $0x320] ss:$16 sps:$4 sm:$0xff]  }
 0x13b   : > { %1759 = vmatprep.subr.bf16.mxu0 %v4347_v39  ;;  %1812 = vmatprep.subr.bf16.mxu1 %v4350_v43  ;;  %v4425_v39 = vld [vmem:[%s5947_s3 + $0x324] ss:$16 sps:$4 sm:$0xff]   ;;  %v4428_v43 = vld [vmem:[%s5947_s3 + $0x32c] ss:$16 sps:$4 sm:$0xff]  }
 0x13c   : > { %1497 = vmatprep.mubr.bf16.mxu0 %v4633_v30  ;;  %1550 = vmatprep.mubr.bf16.mxu1 %v4633_v30 }
 0x13e   : > { %1760 = vmatpush1.bf16.msra.mxu0 %v4345_v3  ;;  %1813 = vmatpush1.bf16.msra.mxu1 %v4348_v4  ;;  %v4426_v3 = vld [vmem:[%s5947_s3 + $0x328] ss:$16 sps:$4 sm:$0xff]   ;;  %v4431_v4 = vld [vmem:[%s5947_s3 + $0x304] ss:$16 sps:$4 sm:$0xff]  }
 0x13f   : > { %1761 = vmatprep.subr.bf16.mxu0 %v4353_v52  ;;  %1814 = vmatprep.subr.bf16.mxu1 %v4356_v6  ;;  %v4429_v52 = vld [vmem:[%s5947_s3 + $0x300] ss:$16 sps:$4 sm:$0xff]   ;;  %v4432_v6 = vld [vmem:[%s5947_s3 + $0x308] ss:$16 sps:$4 sm:$0xff]  }
 0x141   : > { %1498 = vmatmul.mubr.bf16.gmra.mxu0 %v5232_v14  ;;  %1551 = vmatmul.mubr.bf16.gmra.mxu1 %v5232_v14 }
 0x142   : > { %1762 = vmatpush1.bf16.msra.mxu0 %v4351_v10  ;;  %1815 = vmatpush1.bf16.msra.mxu1 %v4354_v11  ;;  %v4440_v10 = vld [vmem:[%s5947_s3 + $0x4ec] ss:$16 sps:$4 sm:$0xff]   ;;  %v4435_v11 = vld [vmem:[%s5947_s3 + $0x4e0] ss:$16 sps:$4 sm:$0xff]  }
 0x143   : > { %1763 = vmatprep.subr.bf16.mxu0 %v4359_v31  ;;  %1816 = vmatprep.subr.bf16.mxu1 %v4362_v32  ;;  %v4438_v31 = vld [vmem:[%s5947_s3 + $0x4e8] ss:$16 sps:$4 sm:$0xff]   ;;  %v4443_v32 = vld [vmem:[%s5947_s3 + $0x4c4] ss:$16 sps:$4 sm:$0xff]  }
 0x144   : > { %1789 = vmatprep.mubr.bf16.mxu0 %v4633_v30  ;;  %1842 = vmatprep.mubr.bf16.mxu1 %v4633_v30 }
 0x146   : > { %1764 = vmatpush1.bf16.msra.mxu0 %v4357_v33  ;;  %1817 = vmatpush1.bf16.msra.mxu1 %v4360_v34  ;;  %v4446_v33 = vld [vmem:[%s5947_s3 + $0x4cc] ss:$16 sps:$4 sm:$0xff]   ;;  %v4441_v34 = vld [vmem:[%s5947_s3 + $0x4c0] ss:$16 sps:$4 sm:$0xff]  }
 0x147   : > { %1765 = vmatprep.subr.bf16.mxu0 %v4365_v15  ;;  %1818 = vmatprep.subr.bf16.mxu1 %v4368_v16  ;;  %v4444_v15 = vld [vmem:[%s5947_s3 + $0x4c8] ss:$16 sps:$4 sm:$0xff]   ;;  %v4449_v16 = vld [vmem:[%s5947_s3 + $0x4a4] ss:$16 sps:$4 sm:$0xff]  }
 0x14a   : > { %1766 = vmatpush1.bf16.msra.mxu0 %v4363_v17  ;;  %1819 = vmatpush1.bf16.msra.mxu1 %v4366_v18  ;;  %v4447_v17 = vld [vmem:[%s5947_s3 + $0x4a0] ss:$16 sps:$4 sm:$0xff]   ;;  %v4450_v18 = vld [vmem:[%s5947_s3 + $0x4a8] ss:$16 sps:$4 sm:$0xff]  }
 0x14b   : > { %1767 = vmatprep.subr.bf16.mxu0 %v4371_v19  ;;  %1820 = vmatprep.subr.bf16.mxu1 %v4374_v20  ;;  %v4455_v19 = vld [vmem:[%s5947_s3 + $0x484] ss:$16 sps:$4 sm:$0xff]   ;;  %v4458_v20 = vld [vmem:[%s5947_s3 + $0x48c] ss:$16 sps:$4 sm:$0xff]  }
 0x14e   : > { %1768 = vmatpush1.bf16.msra.mxu0 %v4369_v21  ;;  %1821 = vmatpush1.bf16.msra.mxu1 %v4372_v23  ;;  %v4453_v21 = vld [vmem:[%s5947_s3 + $0x480] ss:$16 sps:$4 sm:$0xff]   ;;  %v4456_v23 = vld [vmem:[%s5947_s3 + $0x488] ss:$16 sps:$4 sm:$0xff]  }
 0x14f   : > { %1769 = vmatprep.subr.bf16.mxu0 %v4377_v24  ;;  %1822 = vmatprep.subr.bf16.mxu1 %v4380_v27  ;;  %v4461_v24 = vld [vmem:[%s5947_s3 + $0x464] ss:$16 sps:$4 sm:$0xff]   ;;  %v4459_v27 = vld [vmem:[%s5947_s3 + $0x460] ss:$16 sps:$4 sm:$0xff]  }
 0x152   : > { %1770 = vmatpush1.bf16.msra.mxu0 %v4375_v28  ;;  %1823 = vmatpush1.bf16.msra.mxu1 %v4378_v29  ;;  %v4462_v28 = vld [vmem:[%s5947_s3 + $0x468] ss:$16 sps:$4 sm:$0xff]   ;;  %v4467_v29 = vld [vmem:[%s5947_s3 + $0x444] ss:$16 sps:$4 sm:$0xff]  }
 0x153   : > { %1771 = vmatprep.subr.bf16.mxu0 %v4383_v35  ;;  %1824 = vmatprep.subr.bf16.mxu1 %v4386_v36  ;;  %v4470_v35 = vld [vmem:[%s5947_s3 + $0x44c] ss:$16 sps:$4 sm:$0xff]   ;;  %v4465_v36 = vld [vmem:[%s5947_s3 + $0x440] ss:$16 sps:$4 sm:$0xff]  }
 0x156   : > { %1772 = vmatpush1.bf16.msra.mxu0 %v4381_v37  ;;  %1825 = vmatpush1.bf16.msra.mxu1 %v4384_v8  ;;  %v4468_v37 = vld [vmem:[%s5947_s3 + $0x448] ss:$16 sps:$4 sm:$0xff]   ;;  %v4473_v8 = vld [vmem:[%s5947_s3 + $0x424] ss:$16 sps:$4 sm:$0xff]  }
 0x157   : > { %2075 = vmatprep.subr.bf16.mxu0 %v4389_v9  ;;  %2128 = vmatprep.subr.bf16.mxu1 %v4392_v12  ;;  %v4476_v9 = vld [vmem:[%s5947_s3 + $0x42c] ss:$16 sps:$4 sm:$0xff]   ;;  %v4471_v12 = vld [vmem:[%s5947_s3 + $0x420] ss:$16 sps:$4 sm:$0xff]  }
 0x159   : > { %1790 = vmatmul.mubr.bf16.vlgmr.msra.gmra.mxu0 %v1562_v41  ;;  %1843 = vmatmul.mubr.bf16.vlgmr.msra.gmra.mxu1 %v1562_v41  ;;  %v4482_v41 = vld [vmem:[%s5947_s3 + $0x40c] ss:$16 sps:$4 sm:$0xff]  }
 0x15a   : > { %2076 = vmatpush1.bf16.msra.mxu0 %v4387_v13  ;;  %2129 = vmatpush1.bf16.msra.mxu1 %v4390_v38  ;;  %v4474_v13 = vld [vmem:[%s5947_s3 + $0x428] ss:$16 sps:$4 sm:$0xff]   ;;  %v4479_v38 = vld [vmem:[%s5947_s3 + $0x404] ss:$16 sps:$4 sm:$0xff]  }
 0x15b   : > { %2077 = vmatprep.subr.bf16.mxu0 %v4395_v42  ;;  %2130 = vmatprep.subr.bf16.mxu1 %v4398_v46  ;;  %v4477_v42 = vld [vmem:[%s5947_s3 + $0x400] ss:$16 sps:$4 sm:$0xff]   ;;  %v4480_v46 = vld [vmem:[%s5947_s3 + $0x408] ss:$16 sps:$4 sm:$0xff]  }
 0x15c   : > { %1799 = vmatprep.mubr.bf16.mxu0 %v4633_v30  ;;  %1852 = vmatprep.mubr.bf16.mxu1 %v4633_v30 }
 0x15e   : > { %2078 = vmatpush1.bf16.msra.mxu0 %v4393_v49  ;;  %2131 = vmatpush1.bf16.msra.mxu1 %v4396_v25  ;;  %v4485_v49 = vld [vmem:[%s5947_s3 + $0x5e4] ss:$16 sps:$4 sm:$0xff]   ;;  %v4488_v25 = vld [vmem:[%s5947_s3 + $0x5ec] ss:$16 sps:$4 sm:$0xff]  }
 0x15f   : > { %2079 = vmatprep.subr.bf16.mxu0 %v4401_v50  ;;  %2132 = vmatprep.subr.bf16.mxu1 %v4404_v51  ;;  %v4483_v50 = vld [vmem:[%s5947_s3 + $0x5e0] ss:$16 sps:$4 sm:$0xff]   ;;  %v4486_v51 = vld [vmem:[%s5947_s3 + $0x5e8] ss:$16 sps:$4 sm:$0xff]  }
 0x161   : > { %1800 = vmatmul.mubr.bf16.gmra.mxu0 %v1563_v47  ;;  %1853 = vmatmul.mubr.bf16.gmra.mxu1 %v1563_v47  ;;  %v4489_v47 = vld [vmem:[%s5947_s3 + $0x5c0] ss:$16 sps:$4 sm:$0xff]  }
 0x162   : > { %2080 = vmatpush1.bf16.msra.mxu0 %v4399_v53  ;;  %2133 = vmatpush1.bf16.msra.mxu1 %v4402_v57  ;;  %v4491_v53 = vld [vmem:[%s5947_s3 + $0x5c4] ss:$16 sps:$4 sm:$0xff]   ;;  %v4494_v57 = vld [vmem:[%s5947_s3 + $0x5cc] ss:$16 sps:$4 sm:$0xff]  }
 0x163   : > { %2081 = vmatprep.subr.bf16.mxu0 %v4407_v54  ;;  %2134 = vmatprep.subr.bf16.mxu1 %v4410_v58  ;;  %v4492_v54 = vld [vmem:[%s5947_s3 + $0x5c8] ss:$16 sps:$4 sm:$0xff]   ;;  %v4497_v58 = vld [vmem:[%s5947_s3 + $0x5a4] ss:$16 sps:$4 sm:$0xff]  }
 0x164   : > { %2107 = vmatprep.mubr.bf16.mxu0 %v4633_v30  ;;  %2160 = vmatprep.mubr.bf16.mxu1 %v4633_v30 }
 0x166   : > { %2082 = vmatpush1.bf16.msra.mxu0 %v4405_v55  ;;  %2135 = vmatpush1.bf16.msra.mxu1 %v4408_v22  ;;  %v4495_v55 = vld [vmem:[%s5947_s3 + $0x5a0] ss:$16 sps:$4 sm:$0xff]   ;;  %v4498_v22 = vld [vmem:[%s5947_s3 + $0x5a8] ss:$16 sps:$4 sm:$0xff]  }
 0x167   : > { %2083 = vmatprep.subr.bf16.mxu0 %v4413_v48  ;;  %2136 = vmatprep.subr.bf16.mxu1 %v4416_v59  ;;  %v4503_v48 = vld [vmem:[%s5947_s3 + $0x584] ss:$16 sps:$4 sm:$0xff]   ;;  %v4506_v59 = vld [vmem:[%s5947_s3 + $0x58c] ss:$16 sps:$4 sm:$0xff]  }
 0x16a   : > { %2084 = vmatpush1.bf16.msra.mxu0 %v4411_v60  ;;  %2137 = vmatpush1.bf16.msra.mxu1 %v4414_v61  ;;  %v4501_v60 = vld [vmem:[%s5947_s3 + $0x580] ss:$16 sps:$4 sm:$0xff]   ;;  %v4504_v61 = vld [vmem:[%s5947_s3 + $0x588] ss:$16 sps:$4 sm:$0xff]  }
 0x16b   : > { %2085 = vmatprep.subr.bf16.mxu0 %v4419_v62  ;;  %2138 = vmatprep.subr.bf16.mxu1 %v4422_v63  ;;  %v4509_v62 = vld [vmem:[%s5947_s3 + $0x564] ss:$16 sps:$4 sm:$0xff]   ;;  %v4507_v63 = vld [vmem:[%s5947_s3 + $0x560] ss:$16 sps:$4 sm:$0xff]  }
 0x16e   : > { %2086 = vmatpush1.bf16.msra.mxu0 %v4417_v0  ;;  %2139 = vmatpush1.bf16.msra.mxu1 %v4420_v1  ;;  %v4510_v0 = vld [vmem:[%s5947_s3 + $0x568] ss:$16 sps:$4 sm:$0xff]   ;;  %v4515_v1 = vld [vmem:[%s5947_s3 + $0x544] ss:$16 sps:$4 sm:$0xff]  }
 0x16f   : > { %2087 = vmatprep.subr.bf16.mxu0 %v4425_v39  ;;  %2140 = vmatprep.subr.bf16.mxu1 %v4428_v43  ;;  %v4518_v39 = vld [vmem:[%s5947_s3 + $0x54c] ss:$16 sps:$4 sm:$0xff]   ;;  %v4513_v43 = vld [vmem:[%s5947_s3 + $0x540] ss:$16 sps:$4 sm:$0xff]  }
 0x172   : > { %2088 = vmatpush1.bf16.msra.mxu0 %v4423_v44  ;;  %2141 = vmatpush1.bf16.msra.mxu1 %v4426_v3  ;;  %v4516_v44 = vld [vmem:[%s5947_s3 + $0x548] ss:$16 sps:$4 sm:$0xff]   ;;  %v4521_v3 = vld [vmem:[%s5947_s3 + $0x524] ss:$16 sps:$4 sm:$0xff]  }
 0x173   : > { %2089 = vmatprep.subr.bf16.mxu0 %v4431_v4  ;;  %2142 = vmatprep.subr.bf16.mxu1 %v4434_v5  ;;  %v4524_v4 = vld [vmem:[%s5947_s3 + $0x52c] ss:$16 sps:$4 sm:$0xff]   ;;  %v4519_v5 = vld [vmem:[%s5947_s3 + $0x520] ss:$16 sps:$4 sm:$0xff]  }
 0x176   : > { %2090 = vmatpush1.bf16.msra.mxu0 %v4429_v52  ;;  %2143 = vmatpush1.bf16.msra.mxu1 %v4432_v6  ;;  %v4522_v52 = vld [vmem:[%s5947_s3 + $0x528] ss:$16 sps:$4 sm:$0xff]   ;;  %v4527_v6 = vld [vmem:[%s5947_s3 + $0x504] ss:$16 sps:$4 sm:$0xff]  }
 0x177   : > { %2392 = vmatprep.subr.bf16.mxu0 %v4437_v7  ;;  %2445 = vmatprep.subr.bf16.mxu1 %v4440_v10  ;;  %v4530_v7 = vld [vmem:[%s5947_s3 + $0x50c] ss:$16 sps:$4 sm:$0xff]   ;;  %v4525_v10 = vld [vmem:[%s5947_s3 + $0x500] ss:$16 sps:$4 sm:$0xff]  }
 0x179   : > { %2108 = vmatmul.mubr.bf16.vlgmr.msra.gmra.mxu0 %v5067_v26  ;;  %2161 = vmatmul.mubr.bf16.vlgmr.msra.gmra.mxu1 %v5067_v26  ;;  %v4452_v26 = vld [vmem:[%s5947_s3 + $0x4ac] ss:$16 sps:$4 sm:$0xff]  }
 0x17a   : > { %2393 = vmatpush1.bf16.msra.mxu0 %v4435_v11  ;;  %2446 = vmatpush1.bf16.msra.mxu1 %v4438_v31  ;;  %v4528_v11 = vld [vmem:[%s5947_s3 + $0x508] ss:$16 sps:$4 sm:$0xff]  }
 0x17b   : > { %2394 = vmatprep.subr.bf16.mxu0 %v4443_v32  ;;  %2447 = vmatprep.subr.bf16.mxu1 %v4446_v33 }
 0x17c   : > { %2117 = vmatprep.mubr.bf16.mxu0 %v4633_v30  ;;  %2170 = vmatprep.mubr.bf16.mxu1 %v4633_v30 }
 0x17e   : > { %2395 = vmatpush1.bf16.msra.mxu0 %v4441_v34  ;;  %2448 = vmatpush1.bf16.msra.mxu1 %v4444_v15 }
 0x17f   : > { %2396 = vmatprep.subr.bf16.mxu0 %v4449_v16  ;;  %2449 = vmatprep.subr.bf16.mxu1 %v4452_v26  ;;  %v4533_v26 = vld [vmem:[%s5949_s5 + $0x30] sm:$0xff]  }
 0x181   : > { %2118 = vmatmul.mubr.bf16.gmra.mxu0 %v5163_v45  ;;  %2171 = vmatmul.mubr.bf16.gmra.mxu1 %v5163_v45  ;;  %v4464_v45 = vld [vmem:[%s5947_s3 + $0x46c] ss:$16 sps:$4 sm:$0xff]  }
 0x182   : > { %2397 = vmatpush1.bf16.msra.mxu0 %v4447_v17  ;;  %2450 = vmatpush1.bf16.msra.mxu1 %v4450_v18 }
 0x183   : > { %2398 = vmatprep.subr.bf16.mxu0 %v4455_v19  ;;  %2451 = vmatprep.subr.bf16.mxu1 %v4458_v20  ;;  %v4534_v19 = vld [vmem:[%s5949_s5 + $0x70] sm:$0xff]  }
 0x184   : > { %2424 = vmatprep.mubr.bf16.mxu0 %v4633_v30  ;;  %2477 = vmatprep.mubr.bf16.mxu1 %v4633_v30 }
 0x186   : > { %2399 = vmatpush1.bf16.msra.mxu0 %v4453_v21  ;;  %2452 = vmatpush1.bf16.msra.mxu1 %v4456_v23  ;;  %v4535_v23 = vld [vmem:[%s5949_s5 + $0x28] sm:$0xff]  }
 0x187   : > { %2400 = vmatprep.subr.bf16.mxu0 %v4461_v24  ;;  %2453 = vmatprep.subr.bf16.mxu1 %v4464_v45  ;;  %v4536_v24 = vld [vmem:[%s5949_s5 + $0x68] sm:$0xff]  }
 0x18a   : > { %2401 = vmatpush1.bf16.msra.mxu0 %v4459_v27  ;;  %2454 = vmatpush1.bf16.msra.mxu1 %v4462_v28  ;;  %v4537_v28 = vld [vmem:[%s5949_s5 + $0x20] sm:$0xff]  }
 0x18b   : > { %2402 = vmatprep.subr.bf16.mxu0 %v4467_v29  ;;  %2455 = vmatprep.subr.bf16.mxu1 %v4470_v35  ;;  %v4538_v29 = vld [vmem:[%s5949_s5 + $0x60] sm:$0xff]  }
 0x18e   : > { %2403 = vmatpush1.bf16.msra.mxu0 %v4465_v36  ;;  %2456 = vmatpush1.bf16.msra.mxu1 %v4468_v37  ;;  %v4539_v37 = vld [vmem:[%s5949_s5 + $0x18] sm:$0xff]  }
 0x18f   : > { %2404 = vmatprep.subr.bf16.mxu0 %v4473_v8  ;;  %2457 = vmatprep.subr.bf16.mxu1 %v4476_v9 }
 0x192   : > { %2405 = vmatpush1.bf16.msra.mxu0 %v4471_v12  ;;  %2458 = vmatpush1.bf16.msra.mxu1 %v4474_v13 }
 0x193   : > { %2406 = vmatprep.subr.bf16.mxu0 %v4479_v38  ;;  %2459 = vmatprep.subr.bf16.mxu1 %v4482_v41  ;;  %v4540_v38 = vld [vmem:[%s5949_s5 + $0x58] sm:$0xff]   ;;  %v4541_v41 = vld [vmem:[%s5949_s5 + $0x10] sm:$0xff]  }
 0x196   : > { %2407 = vmatpush1.bf16.msra.mxu0 %v4477_v42  ;;  %2460 = vmatpush1.bf16.msra.mxu1 %v4480_v46 }
 0x197   : > { %2709 = vmatprep.subr.bf16.mxu0 %v4485_v49  ;;  %2762 = vmatprep.subr.bf16.mxu1 %v4488_v25 }
 0x199   : > { %2425 = vmatmul.mubr.bf16.vlgmr.msra.gmra.mxu0 %v5232_v14  ;;  %2478 = vmatmul.mubr.bf16.vlgmr.msra.gmra.mxu1 %v5232_v14  ;;  %v4500_v14 = vld [vmem:[%s5947_s3 + $0x5ac] ss:$16 sps:$4 sm:$0xff]  }
 0x19a   : > { %2710 = vmatpush1.bf16.msra.mxu0 %v4483_v50  ;;  %2763 = vmatpush1.bf16.msra.mxu1 %v4486_v51  ;;  %v4542_v50 = vld [vmem:[%s5949_s5 + $0x50] sm:$0xff]   ;;  %v4543_v51 = vld [vmem:[%s5949_s5 + $0x8] sm:$0xff]  }
 0x19b   : > { %2711 = vmatprep.subr.bf16.mxu0 %v4491_v53  ;;  %2764 = vmatprep.subr.bf16.mxu1 %v4494_v57 }
 0x19c   : > { %2434 = vmatprep.mubr.bf16.mxu0 %v4633_v30  ;;  %2487 = vmatprep.mubr.bf16.mxu1 %v4633_v30 }
 0x19e   : > { %2712 = vmatpush1.bf16.msra.mxu0 %v4489_v47  ;;  %2765 = vmatpush1.bf16.msra.mxu1 %v4492_v54 }
 0x19f   : > { %2713 = vmatprep.subr.bf16.mxu0 %v4497_v58  ;;  %2766 = vmatprep.subr.bf16.mxu1 %v4500_v14 }
 0x1a1   : > { %2435 = vmatmul.mubr.bf16.gmra.mxu0 %v5184_v56  ;;  %2488 = vmatmul.mubr.bf16.gmra.mxu1 %v5184_v56  ;;  %v4512_v56 = vld [vmem:[%s5947_s3 + $0x56c] ss:$16 sps:$4 sm:$0xff]  }
 0x1a2   : > { %2714 = vmatpush1.bf16.msra.mxu0 %v4495_v55  ;;  %2767 = vmatpush1.bf16.msra.mxu1 %v4498_v22 }
 0x1a3   : > { %2715 = vmatprep.subr.bf16.mxu0 %v4503_v48  ;;  %2768 = vmatprep.subr.bf16.mxu1 %v4506_v59  ;;  %v4544_v48 = vld [vmem:[%s5949_s5 + $0x48] sm:$0xff]   ;;  %v4545_v59 = vld [vmem:[%s5949_s5] sm:$0xff]  }
 0x1a4   : > { %2741 = vmatprep.mubr.bf16.mxu0 %v4633_v30  ;;  %2794 = vmatprep.mubr.bf16.mxu1 %v4633_v30 }
 0x1a6   : > { %2716 = vmatpush1.bf16.msra.mxu0 %v4501_v60  ;;  %2769 = vmatpush1.bf16.msra.mxu1 %v4504_v61 }
 0x1a7   : > { %2717 = vmatprep.subr.bf16.mxu0 %v4509_v62  ;;  %2770 = vmatprep.subr.bf16.mxu1 %v4512_v56 }
 0x1aa   : > { %2718 = vmatpush1.bf16.msra.mxu0 %v4507_v63  ;;  %2771 = vmatpush1.bf16.msra.mxu1 %v4510_v0 }
 0x1ab   : > { %2719 = vmatprep.subr.bf16.mxu0 %v4515_v1  ;;  %2772 = vmatprep.subr.bf16.mxu1 %v4518_v39 }
 0x1ae   : > { %2720 = vmatpush1.bf16.msra.mxu0 %v4513_v43  ;;  %2773 = vmatpush1.bf16.msra.mxu1 %v4516_v44  ;;  %v4546_v43 = vld [vmem:[%s5949_s5 + $0x40] sm:$0xff]  }
 0x1af   : > { %2721 = vmatprep.subr.bf16.mxu0 %v4521_v3  ;;  %2774 = vmatprep.subr.bf16.mxu1 %v4524_v4 }
 0x1b2   : > { %2722 = vmatpush1.bf16.msra.mxu0 %v4519_v5  ;;  %2775 = vmatpush1.bf16.msra.mxu1 %v4522_v52 }
 0x1b3   : > { %2723 = vmatprep.subr.bf16.mxu0 %v4527_v6  ;;  %2776 = vmatprep.subr.bf16.mxu1 %v4530_v7 }
 0x1b6   : > { %2724 = vmatpush1.bf16.msra.mxu0 %v4525_v10  ;;  %2777 = vmatpush1.bf16.msra.mxu1 %v4528_v11 }
 0x1b9   : > { %2742 = vmatmul.mubr.bf16.vlgmr.msra.gmra.mxu0 %v5103_v2  ;;  %2795 = vmatmul.mubr.bf16.vlgmr.msra.gmra.mxu1 %v5103_v2  ;;  %v5954_v2 = vmov 0.0  }
 0x1ba   : > { %2751 = vmatprep.mubr.bf16.mxu0 %v4633_v30  ;;  %2804 = vmatprep.mubr.bf16.mxu1 %v4633_v30  ;;  %v4531_v30 = vld [vmem:[%s5949_s5 + $0x38] sm:$0xff]  }
 0x1bb   : > { %4047 = vmatprep.subr.bf16.mxu1 %v5954_v2  ;;  %4027 = vmatprep.subr.bf16.mxu0 %v5954_v2 }
 0x1bc   : > { %4048 = vmatpush3.bf16.msra.mxu1 %v4531_v30 }
 0x1bd   : > { %4049 = vmatprep.subr.bf16.mxu1 %v5954_v2 }
 0x1c0   : > { %4050 = vmatpush3.bf16.msra.mxu1 %v4533_v26 }
 0x1c1   : > { %2752 = vmatmul.mubr.bf16.gmra.mxu0 %v5203_v40  ;;  %2805 = vmatmul.mubr.bf16.gmra.mxu1 %v5203_v40  ;;  %v4532_v40 = vld [vmem:[%s5949_s5 + $0x78] sm:$0xff]  }
 0x1c2   : > { %4028 = vmatpush3.bf16.msra.mxu0 %v4532_v40  ;;  %4051 = vmatprep.subr.bf16.mxu1 %v5954_v2 }
 0x1c3   : > { %4029 = vmatprep.subr.bf16.mxu0 %v5954_v2  ;;  %4063 = vmatprep.mubr.msk.bf16.mxu1 %vm4635_vm2, %v5954_v2 }
 0x1c4   : > { %4052 = vmatpush3.bf16.msra.mxu1 %v4535_v23  ;;  %4043 = vmatprep.mubr.msk.bf16.mxu0 %vm4635_vm2, %v5954_v2 }
 0x1c5   : > { %4053 = vmatprep.subr.bf16.mxu1 %v5954_v2 }
 0x1c6   : > { %4030 = vmatpush3.bf16.msra.mxu0 %v4534_v19 }
 0x1c7   : > { %4031 = vmatprep.subr.bf16.mxu0 %v5954_v2 }
 0x1c8   : > { %4054 = vmatpush3.bf16.msra.mxu1 %v4537_v28 }
 0x1c9   : > { %4055 = vmatprep.subr.bf16.mxu1 %v5954_v2 }
 0x1ca   : > { %4032 = vmatpush3.bf16.msra.mxu0 %v4536_v24 }
 0x1cb   : > { %4033 = vmatprep.subr.bf16.mxu0 %v5954_v2 }
 0x1cc   : > { %4056 = vmatpush3.bf16.msra.mxu1 %v4539_v37 }
 0x1cd   : > { %4057 = vmatprep.subr.bf16.mxu1 %v5954_v2 }
 0x1ce   : > { %4034 = vmatpush3.bf16.msra.mxu0 %v4538_v29 }
 0x1cf   : > { %4035 = vmatprep.subr.bf16.mxu0 %v5954_v2 }
 0x1d0   : > { %4058 = vmatpush3.bf16.msra.mxu1 %v4541_v41 }
 0x1d1   : > { %4059 = vmatprep.subr.bf16.mxu1 %v5954_v2 }
 0x1d2   : > { %4036 = vmatpush3.bf16.msra.mxu0 %v4540_v38 }
 0x1d3   : > { %4037 = vmatprep.subr.bf16.mxu0 %v5954_v2 }
 0x1d4   : > { %4060 = vmatpush3.bf16.msra.mxu1 %v4543_v51 }
 0x1d5   : > { %4061 = vmatprep.subr.bf16.mxu1 %v5954_v2 }
 0x1d6   : > { %4038 = vmatpush3.bf16.msra.mxu0 %v4542_v50 }
 0x1d7   : > { %4039 = vmatprep.subr.bf16.mxu0 %v5954_v2 }
 0x1d8   : > { %4062 = vmatpush3.bf16.msra.mxu1 %v4545_v59 }
 0x1d9   : > { %v5618_v31 = vpop.f32.mrf.mxu0  ;;  %v5620_v32 = vpop.f32.mrf.mxu1  ;;  %4087 = vmatprep.subr.bf16.mxu1 %v5954_v2 }
 0x1da   : > { %4040 = vmatpush3.bf16.msra.mxu0 %v4544_v48 }
 0x1db   : > { %v5622_v33 = vpop.f32.mrf.mxu0  ;;  %v5624_v34 = vpop.f32.mrf.mxu1  ;;  %4041 = vmatprep.subr.bf16.mxu0 %v5954_v2 }
 0x1dd   : > { %v5626_v15 = vpop.f32.mrf.mxu0  ;;  %v5628_v16 = vpop.f32.mrf.mxu1 }
 0x1de   : > { %4042 = vmatpush3.bf16.msra.mxu0 %v4546_v43 }
 0x1df   : > { %v5641_v17 = vpop.f32.mrf.mxu0  ;;  %v5643_v18 = vpop.f32.mrf.mxu1  ;;  %4067 = vmatprep.subr.bf16.mxu0 %v5954_v2 }
 0x1e9   : > { %v1233_v20 = vpop.f32.mrf.mxu0  ;;  %v1286_v21 = vpop.f32.mrf.mxu1 }
 0x1eb   : > { %v1235_v45 = vpop.f32.mrf.mxu0  ;;  %v1288_v27 = vpop.f32.mrf.mxu1 }
 0x1ed   : > { %v1237_v35 = vpop.f32.mrf.mxu0  ;;  %v1290_v36 = vpop.f32.mrf.mxu1 }
 0x1ef   : > { %v1239_v8 = vpop.f32.mrf.mxu0  ;;  %v1292_v9 = vpop.f32.mrf.mxu1 }
 0x1f9   : > { %v5671_v12 = vpop.f32.mrf.mxu0  ;;  %v5673_v13 = vpop.f32.mrf.mxu1 }
 0x1fb   : > { %v5682_v42 = vpop.f32.mrf.mxu0  ;;  %v5684_v46 = vpop.f32.mrf.mxu1 }
 0x1fd   : > { %v5686_v49 = vpop.f32.mrf.mxu0  ;;  %v5688_v25 = vpop.f32.mrf.mxu1 }
 0x1ff   : > { %v5698_v53 = vpop.f32.mrf.mxu0  ;;  %v5700_v57 = vpop.f32.mrf.mxu1 }
 0x201   : > { %v1499_v47 = vpop.f32.mrf.mxu0  ;;  %v1552_v54 = vpop.f32.mrf.mxu1 }
 0x202   : > { %v1500_v58 = vadd.f32 %v1499_v47, %v1233_v20  ;;  %v1553_v14 = vadd.f32 %v1552_v54, %v1286_v21 }
 0x203   : > { %v1501_v55 = vpop.f32.mrf.mxu0  ;;  %v1554_v22 = vpop.f32.mrf.mxu1 }
 0x204   : > { %v1502_v60 = vadd.f32 %v1501_v55, %v1235_v45  ;;  %v1555_v61 = vadd.f32 %v1554_v22, %v1288_v27 }
 0x205   : > { %v1503_v62 = vpop.f32.mrf.mxu0  ;;  %v1556_v56 = vpop.f32.mrf.mxu1 }
 0x206   : > { %v1504_v63 = vadd.f32 %v1503_v62, %v1237_v35  ;;  %v1557_v0 = vadd.f32 %v1556_v56, %v1290_v36 }
 0x207   : > { %v1505_v1 = vpop.f32.mrf.mxu0  ;;  %v1558_v39 = vpop.f32.mrf.mxu1 }
 0x208   : > { %v5715_v44 = vadd.f32 %v1505_v1, %v1239_v8  ;;  %v5717_v3 = vadd.f32 %v1558_v39, %v1292_v9 }
 0x219   : > { %v1791_v4 = vpop.f32.mrf.mxu0  ;;  %v1844_v5 = vpop.f32.mrf.mxu1 }
 0x21b   : > { %v1793_v52 = vpop.f32.mrf.mxu0  ;;  %v1846_v6 = vpop.f32.mrf.mxu1 }
 0x21d   : > { %v1795_v7 = vpop.f32.mrf.mxu0  ;;  %v1848_v10 = vpop.f32.mrf.mxu1 }
 0x21f   : > { %v5724_v11 = vpop.f32.mrf.mxu0  ;;  %v5726_v30 = vpop.f32.mrf.mxu1 }
 0x221   : > { %v1801_v40 = vpop.f32.mrf.mxu0  ;;  %v1854_v26 = vpop.f32.mrf.mxu1 }
 0x222   : > { %v5728_v19 = vadd.f32 %v1801_v40, %v1500_v58  ;;  %v5730_v20 = vadd.f32 %v1854_v26, %v1553_v14 }
 0x223   : > { %v1803_v21 = vpop.f32.mrf.mxu0  ;;  %v1856_v23 = vpop.f32.mrf.mxu1 }
 0x224   : > { %v5732_v24 = vadd.f32 %v1803_v21, %v1502_v60  ;;  %v5734_v45 = vadd.f32 %v1856_v23, %v1555_v61 }
 0x225   : > { %v1805_v27 = vpop.f32.mrf.mxu0  ;;  %v1858_v28 = vpop.f32.mrf.mxu1 }
 0x226   : > { %v5736_v29 = vadd.f32 %v1805_v27, %v1504_v63  ;;  %v5738_v35 = vadd.f32 %v1858_v28, %v1557_v0 }
 0x227   : > { %v1807_v36 = vpop.f32.mrf.mxu0  ;;  %v1860_v37 = vpop.f32.mrf.mxu1 }
 0x228   : > { %5958 = vst [vmem:[#allocation6_spill] sm:$0xff] %v5738_v35 }
 0x239   : > { %v2109_v8 = vpop.f32.mrf.mxu0  ;;  %v2162_v9 = vpop.f32.mrf.mxu1 }
 0x23b   : > { %v2111_v38 = vpop.f32.mrf.mxu0  ;;  %v2164_v41 = vpop.f32.mrf.mxu1 }
 0x23d   : > { %v2113_v50 = vpop.f32.mrf.mxu0  ;;  %v2166_v51 = vpop.f32.mrf.mxu1 }
 0x23f   : > { %v2115_v47 = vpop.f32.mrf.mxu0  ;;  %v2168_v54 = vpop.f32.mrf.mxu1 }
 0x241   : > { %v2119_v58 = vpop.f32.mrf.mxu0  ;;  %v2172_v14 = vpop.f32.mrf.mxu1 }
 0x243   : > { %v5740_v55 = vpop.f32.mrf.mxu0  ;;  %v5742_v22 = vpop.f32.mrf.mxu1 }
 0x245   : > { %v5744_v48 = vpop.f32.mrf.mxu0  ;;  %v5746_v59 = vpop.f32.mrf.mxu1 }
 0x246   : > { %5959 = vst [vmem:[#allocation7_spill] sm:$0xff] %v5746_v59  ;;  %v1492_v59 = vadd.f32 %v5682_v42, %v5622_v33 }
 0x247   : > { %v5748_v60 = vpop.f32.mrf.mxu0  ;;  %v5750_v61 = vpop.f32.mrf.mxu1 }
 0x248   : > { %5960 = vst [vmem:[#allocation8_spill] sm:$0xff] %v5748_v60  ;;  %5961 = vst [vmem:[#allocation9_spill] sm:$0xff] %v5750_v61  ;;  %v1490_v61 = vadd.f32 %v5671_v12, %v5618_v31  ;;  %v1543_v60 = vadd.f32 %v5673_v13, %v5620_v32  ;;  %v1496_v31 = vadd.f32 %v5698_v53, %v5641_v17 }
 0x249   : > { %v1549_v32 = vadd.f32 %v5700_v57, %v5643_v18  ;;  %v1878_v17 = vadd.f32 %v1860_v37, %v5717_v3  ;;  %v2191_v3 = vadd.f32 %v2172_v14, %v5730_v20 }
 0x259   : > { %v2426_v62 = vpop.f32.mrf.mxu0  ;;  %v2479_v56 = vpop.f32.mrf.mxu1 }
 0x25b   : > { %v2428_v63 = vpop.f32.mrf.mxu0  ;;  %v2481_v0 = vpop.f32.mrf.mxu1 }
 0x25d   : > { %v2430_v1 = vpop.f32.mrf.mxu0  ;;  %v2483_v39 = vpop.f32.mrf.mxu1 }
 0x25f   : > { %v2432_v43 = vpop.f32.mrf.mxu0  ;;  %v2485_v40 = vpop.f32.mrf.mxu1 }
 0x261   : > { %v5752_v26 = vpop.f32.mrf.mxu0  ;;  %v5754_v21 = vpop.f32.mrf.mxu1 }
 0x262   : > { %5962 = vst [vmem:[#allocation10_spill] sm:$0xff] %v5752_v26  ;;  %5963 = vst [vmem:[#allocation11_spill] sm:$0xff] %v5754_v21  ;;  %v1545_v21 = vadd.f32 %v5684_v46, %v5624_v34  ;;  %v1864_v26 = vadd.f32 %v1793_v52, %v1492_v59 }
 0x263   : > { %v5756_v23 = vpop.f32.mrf.mxu0  ;;  %v5758_v27 = vpop.f32.mrf.mxu1 }
 0x264   : > { %5964 = vst [vmem:[#allocation12_spill] sm:$0xff] %v5756_v23  ;;  %5965 = vst [vmem:[#allocation13_spill] sm:$0xff] %v5758_v27  ;;  %v1494_v23 = vadd.f32 %v5686_v49, %v5626_v15  ;;  %v1863_v27 = vadd.f32 %v1791_v4, %v1490_v61  ;;  %v1866_v35 = vadd.f32 %v1846_v6, %v1545_v21 }
 0x265   : > { %v5760_v28 = vpop.f32.mrf.mxu0  ;;  %v5762_v2 = vpop.f32.mrf.mxu1  ;;  %v2182_v46 = vadd.f32 %v2111_v38, %v1864_v26  ;;  %v1868_v49 = vadd.f32 %v5724_v11, %v1496_v31  ;;  %v1876_v4 = vadd.f32 %v1807_v36, %v5715_v44  ;;  %v2189_v44 = vadd.f32 %v2119_v58, %v5728_v19  ;;  %v5799_v19 = vld [vmem:[%s5948_s4] ss:$0 sm:$0xff] }
 0x266   : > { %5966 = vst [vmem:[#allocation14_spill] sm:$0xff] %v5760_v28  ;;  %5967 = vst [vmem:[#allocation15_spill] sm:$0xff] %v5762_v2  ;;  %v1547_v28 = vadd.f32 %v5688_v25, %v5628_v16  ;;  %v1865_v2 = vadd.f32 %v1844_v5, %v1543_v60  ;;  %v1867_v33 = vadd.f32 %v1795_v7, %v1494_v23 }
 0x267   : > { %v5780_v13 = vpop.f32.mrf.mxu0  ;;  %v5782_v34 = vpop.f32.mrf.mxu1  ;;  %v2181_v15 = vadd.f32 %v2109_v8, %v1863_v27  ;;  %v2184_v16 = vadd.f32 %v2164_v41, %v1866_v35  ;;  %v1870_v25 = vadd.f32 %v5726_v30, %v1549_v32  ;;  %v2499_v52 = vadd.f32 %v2428_v63, %v2182_v46 }
 0x268   : > { %v1869_v12 = vadd.f32 %v1848_v10, %v1547_v28  ;;  %v2183_v42 = vadd.f32 %v2162_v9, %v1865_v2  ;;  %v2185_v7 = vadd.f32 %v2113_v50, %v1867_v33  ;;  %v2186_v8 = vadd.f32 %v2115_v47, %v1868_v49 }
 0x269   : > { %v2498_v57 = vadd.f32 %v2426_v62, %v2181_v15  ;;  %v2501_v6 = vadd.f32 %v2481_v0, %v2184_v16  ;;  %v2188_v2 = vadd.f32 %v2168_v54, %v1870_v25  ;;  %v2190_v47 = vadd.f32 %v5740_v55, %v5732_v24  ;;  %v5969_v24 = vld [vmem:[#allocation7_spill] sm:$0xff] }
 0x26a   : > { %v2500_v5 = vadd.f32 %v2479_v56, %v2183_v42  ;;  %v2187_v10 = vadd.f32 %v2166_v51, %v1869_v12  ;;  %v2502_v36 = vadd.f32 %v2430_v1, %v2185_v7  ;;  %v2503_v61 = vadd.f32 %v2432_v43, %v2186_v8  ;;  %v5968_v43 = vld [vmem:[#allocation6_spill] sm:$0xff]  ;;  %v5974_v12 = vld [vmem:[#allocation8_spill] sm:$0xff]  ;;  %v5975_v42 = vld [vmem:[#allocation9_spill] sm:$0xff] }
 0x26b   : > { %v2505_v62 = vadd.f32 %v2485_v40, %v2188_v2  ;;  %v2192_v54 = vadd.f32 %v5742_v22, %v5734_v45  ;;  %v2193_v56 = vadd.f32 %v5744_v48, %v5736_v29  ;;  %v2195_v55 = vadd.f32 %v5969_v24, %v5968_v43  ;;  %v5970_v40 = vld [vmem:[#allocation10_spill] sm:$0xff]  ;;  %v5971_v22 = vld [vmem:[#allocation11_spill] sm:$0xff]  ;;  %v5972_v29 = vld [vmem:[#allocation12_spill] sm:$0xff] }
 0x26c   : > { %v2504_v37 = vadd.f32 %v2483_v39, %v2187_v10  ;;  %v2506_v45 = vadd.f32 %v5970_v40, %v2189_v44  ;;  %v2508_v26 = vadd.f32 %v5971_v22, %v2191_v3  ;;  %v2507_v48 = vadd.f32 %v5972_v29, %v2190_v47  ;;  %v5973_v27 = vld [vmem:[#allocation13_spill] sm:$0xff]  ;;  %v4557_v43 = vld [vmem:[%s5949_s5 + $0xd0] sm:$0xff]   ;;  %v4561_v22 = vld [vmem:[%s5949_s5 + $0xc0] sm:$0xff]  }
 0x26d   : > { %v2509_v28 = vadd.f32 %v5973_v27, %v2192_v54  ;;  %v2194_v15 = vadd.f32 %v5974_v12, %v1876_v4  ;;  %v2196_v46 = vadd.f32 %v5975_v42, %v1878_v17  ;;  %v5977_v10 = vld [vmem:[#allocation15_spill] sm:$0xff]  ;;  %v4558_v24 = vld [vmem:[%s5949_s5 + $0x90] sm:$0xff]  }
 0x26e   : > { %v2512_v8 = vadd.f32 %v5977_v10, %v2195_v55  ;;  %v4547_v17 = vld [vmem:[%s5949_s5 + $0xf8] sm:$0xff]   ;;  %v4559_v55 = vld [vmem:[%s5949_s5 + $0xc8] sm:$0xff]   ;;  %v3974_v10 = vld [vmem:[%s5950_s6] ss:$0 sm:$0xff] }
 0x26f   : > { %v2511_v2 = vadd.f32 %v5780_v13, %v2194_v15 }
 0x279   : > { %v2743_v53 = vpop.f32.mrf.mxu0  ;;  %v2796_v18 = vpop.f32.mrf.mxu1 }
 0x27a   : > { %v2815_v38 = vadd.f32 %v2743_v53, %v2498_v57  ;;  %v2817_v11 = vadd.f32 %v2796_v18, %v2500_v5 }
 0x27b   : > { %v2745_v9 = vpop.f32.mrf.mxu0  ;;  %v2798_v35 = vpop.f32.mrf.mxu1 }
 0x27c   : > { %v2816_v41 = vadd.f32 %v2745_v9, %v2499_v52  ;;  %v2818_v30 = vadd.f32 %v2798_v35, %v2501_v6  ;;  %v5976_v6 = vld [vmem:[#allocation14_spill] sm:$0xff]  ;;  %v2513_v9 = vadd.f32 %v5782_v34, %v2196_v46  ;;  %v4548_v34 = vld [vmem:[%s5949_s5 + $0xb8] sm:$0xff]  }
 0x27d   : > { %v2747_v59 = vpop.f32.mrf.mxu0  ;;  %v2800_v60 = vpop.f32.mrf.mxu1  ;;  %v2510_v7 = vadd.f32 %v5976_v6, %v2193_v56 }
 0x27e   : > { %v2831_v50 = vmax.f32 %v2815_v38, %v2816_v41  ;;  %v2835_v51 = vmax.f32 %v2817_v11, %v2818_v30  ;;  %v2819_v20 = vadd.f32 %v2747_v59, %v2502_v36  ;;  %v2821_v0 = vadd.f32 %v2800_v60, %v2504_v37 }
 0x27f   : > { %v2749_v58 = vpop.f32.mrf.mxu0  ;;  %v2802_v14 = vpop.f32.mrf.mxu1 }
 0x280   : > { %v2839_v63 = vmax.f32 %v2831_v50, %v2835_v51  ;;  %v2820_v1 = vadd.f32 %v2749_v58, %v2503_v61  ;;  %v2822_v39 = vadd.f32 %v2802_v14, %v2505_v62  ;;  %v4549_v62 = vld [vmem:[%s5949_s5 + $0xf0] sm:$0xff]   ;;  %v5978_v50 = vmov 0.0   ;;  %v4551_v58 = vld [vmem:[%s5949_s5 + $0xe8] sm:$0xff]  }
 0x281   : > { %v2753_v21 = vpop.f32.mrf.mxu0  ;;  %v2806_v23 = vpop.f32.mrf.mxu1  ;;  %v4552_v14 = vld [vmem:[%s5949_s5 + $0xa8] sm:$0xff]  }
 0x282   : > { %v2850_v31 = vadd.f32 %v5799_v19, %v2839_v63  ;;  %v2832_v32 = vmax.f32 %v2819_v20, %v2820_v1  ;;  %v2836_v33 = vmax.f32 %v2821_v0, %v2822_v39  ;;  %v2823_v16 = vadd.f32 %v2753_v21, %v2506_v45  ;;  %v4550_v20 = vld [vmem:[%s5949_s5 + $0xb0] sm:$0xff]   ;;  %v4553_v63 = vld [vmem:[%s5949_s5 + $0xe0] sm:$0xff]   ;;  %v4555_v1 = vld [vmem:[%s5949_s5 + $0xd8] sm:$0xff]  }
 0x283   : > { %v2825_v49 = vadd.f32 %v2806_v23, %v2508_v26  ;;  %v2755_v25 = vpop.f32.mrf.mxu0  ;;  %v2808_v53 = vpop.f32.mrf.mxu1  ;;  %v4554_v0 = vld [vmem:[%s5949_s5 + $0xa0] sm:$0xff]   ;;  %v4556_v39 = vld [vmem:[%s5949_s5 + $0x98] sm:$0xff]   ;;  %v4560_v45 = vld [vmem:[%s5949_s5 + $0x88] sm:$0xff]  }
 0x284   : > { %v2854_v18 = vmax.f32 %v2850_v31, 0.0  ;;  %v2840_v57 = vmax.f32 %v2832_v32, %v2836_v33  ;;  %v2824_v5 = vadd.f32 %v2755_v25, %v2507_v48  ;;  %v2826_v52 = vadd.f32 %v2808_v53, %v2509_v28  ;;  %v4562_v48 = vld [vmem:[%s5949_s5 + $0x80] sm:$0xff]   ;;  %v4564_v31 = vld [vmem:[%s5951_s7 + $0x10] sm:$0xff]   ;;  %v4565_v32 = vld [vmem:[%s5951_s7 + $0x8] sm:$0xff]  }
 0x285   : > { %v2757_v35 = vpop.f32.mrf.mxu0  ;;  %v2810_v4 = vpop.f32.mrf.mxu1  ;;  %v4566_v33 = vld [vmem:[%s5951_s7] sm:$0xff]  }
 0x286   : > { %v2858_v38 = vpack.c.bf16 %v2854_v18, %v2854_v18  ;;  %v2851_v11 = vadd.f32 %v5799_v19, %v2840_v57  ;;  %v2833_v41 = vmax.f32 %v2823_v16, %v2824_v5  ;;  %v2837_v30 = vmax.f32 %v2825_v49, %v2826_v52 }
 0x287   : > { %v2827_v44 = vadd.f32 %v2757_v35, %v2510_v7  ;;  %v2829_v3 = vadd.f32 %v2810_v4, %v2512_v8  ;;  %v2759_v36 = vpop.f32.mrf.mxu0  ;;  %v2812_v37 = vpop.f32.mrf.mxu1 }
 0x288   : > { %v2855_v59 = vmax.f32 %v2851_v11, 0.0  ;;  %v2841_v60 = vmax.f32 %v2833_v41, %v2837_v30  ;;  %v2828_v13 = vadd.f32 %v2759_v36, %v2511_v2  ;;  %v2830_v61 = vadd.f32 %v2812_v37, %v2513_v9  ;;  %4064 = vmatmul.mubr.bf16.vlgmr.msra.gmra.mxu1 %v2858_v38  ;;  %v3975_v41 = vld [vmem:[%s5952_s8] ss:$0 sm:$0xff] }
 0x289   : > { %4088 = vmatpush3.bf16.msra.mxu1 %v4547_v17  ;;  %4103 = vmatprep.mubr.msk.bf16.mxu1 %vm4635_vm2, %v5978_v50 }
 0x28a   : > { %v2875_v51 = vpack.c.bf16 %v2855_v59, %v2855_v59  ;;  %v2834_v47 = vmax.f32 %v2827_v44, %v2828_v13  ;;  %v2838_v54 = vmax.f32 %v2829_v3, %v2830_v61  ;;  %4089 = vmatprep.subr.bf16.mxu1 %v5978_v50  ;;  %v2852_v26 = vadd.f32 %v5799_v19, %v2841_v60 }
 0x28c   : > { %v2842_v56 = vmax.f32 %v2834_v47, %v2838_v54  ;;  %4044 = vmatmul.mubr.bf16.vlgmr.msra.gmra.mxu0 %v2875_v51  ;;  %v2856_v21 = vmax.f32 %v2852_v26, 0.0 }
 0x28d   : > { %4068 = vmatpush3.bf16.msra.mxu0 %v4548_v34  ;;  %4090 = vmatpush3.bf16.msra.mxu1 %v4549_v62 }
 0x28e   : > { %4069 = vmatprep.subr.bf16.mxu0 %v5978_v50  ;;  %4091 = vmatprep.subr.bf16.mxu1 %v5978_v50  ;;  %v2853_v40 = vadd.f32 %v5799_v19, %v2842_v56  ;;  %v3069_v27 = vpack.c.bf16 %v2856_v21, %v2856_v21  ;;  %v4563_v19 = vld [vmem:[%s5951_s7 + $0x18] ss:$0 sps:$4 sm:$0x11]  }
 0x28f   : > { %4083 = vmatprep.mubr.msk.bf16.mxu0 %vm4635_vm2, %v5978_v50  ;;  %v3334_v28 = vsel %vm3332_vm3, %v4563_v19, 0 }
 0x290   : > { %v2857_v29 = vmax.f32 %v2853_v40, 0.0 }
 0x291   : > { %4070 = vmatpush3.bf16.msra.mxu0 %v4550_v20  ;;  %4092 = vmatpush3.bf16.msra.mxu1 %v4551_v58 }
 0x292   : > { %4071 = vmatprep.subr.bf16.mxu0 %v5978_v50  ;;  %4093 = vmatprep.subr.bf16.mxu1 %v5978_v50  ;;  %v3176_v23 = vpack.c.bf16 %v2857_v29, %v2857_v29 }
 0x295   : > { %4072 = vmatpush3.bf16.msra.mxu0 %v4552_v14  ;;  %4094 = vmatpush3.bf16.msra.mxu1 %v4553_v63 }
 0x296   : > { %4073 = vmatprep.subr.bf16.mxu0 %v5978_v50  ;;  %4095 = vmatprep.subr.bf16.mxu1 %v5978_v50 }
 0x299   : > { %4074 = vmatpush3.bf16.msra.mxu0 %v4554_v0  ;;  %4096 = vmatpush3.bf16.msra.mxu1 %v4555_v1 }
 0x29a   : > { %4075 = vmatprep.subr.bf16.mxu0 %v5978_v50  ;;  %4097 = vmatprep.subr.bf16.mxu1 %v5978_v50 }
 0x29d   : > { %4076 = vmatpush3.bf16.msra.mxu0 %v4556_v39  ;;  %4098 = vmatpush3.bf16.msra.mxu1 %v4557_v43 }
 0x29e   : > { %4077 = vmatprep.subr.bf16.mxu0 %v5978_v50  ;;  %4099 = vmatprep.subr.bf16.mxu1 %v5978_v50 }
 0x2a1   : > { %4078 = vmatpush3.bf16.msra.mxu0 %v4558_v24  ;;  %4100 = vmatpush3.bf16.msra.mxu1 %v4559_v55 }
 0x2a2   : > { %4079 = vmatprep.subr.bf16.mxu0 %v5978_v50  ;;  %4101 = vmatprep.subr.bf16.mxu1 %v5978_v50 }
 0x2a5   : > { %4080 = vmatpush3.bf16.msra.mxu0 %v4560_v45  ;;  %4102 = vmatpush3.bf16.msra.mxu1 %v4561_v22 }
 0x2a6   : > { %4081 = vmatprep.subr.bf16.mxu0 %v5978_v50 }
 0x2a8   : > { %4104 = vmatmul.mubr.bf16.vlgmr.msra.gmra.mxu1 %v3176_v23 }
 0x2a9   : > { %4082 = vmatpush3.bf16.msra.mxu0 %v4562_v48 }
 0x2aa   : > { %4107 = vmatprep.subr.bf16.mxu0 %v5978_v50 }
 0x2ac   : > { %4084 = vmatmul.mubr.bf16.vlgmr.msra.gmra.mxu0 %v3069_v27 }
 0x2ad   : > { %4115 = vmatprep.mubr.msk.bf16.mxu0 %vm4635_vm2, %v5978_v50  ;;  %4108 = vmatpush3.bf16.msra.mxu0 %v3334_v28 }
 0x2ae   : > { %4109 = vmatprep.subr.bf16.mxu0 %v5978_v50 }
 0x2b1   : > { %4110 = vmatpush3.bf16.msra.mxu0 %v4564_v31 }
 0x2b2   : > { %4111 = vmatprep.subr.bf16.mxu0 %v5978_v50 }
 0x2b5   : > { %4112 = vmatpush3.bf16.msra.mxu0 %v4565_v32 }
 0x2b6   : > { %4113 = vmatprep.subr.bf16.mxu0 %v5978_v50 }
 0x2b9   : > { %4114 = vmatpush3.bf16.msra.mxu0 %v4566_v33 }
 0x348   : > { %v3063_v12 = vpop.f32.mrf.mxu1 }
 0x34a   : > { %v4065_v15 = vpop.f32.mrf.mxu1 }
 0x34c   : > { %v2975_v42 = vpop.f32.mrf.mxu0  ;;  %v3066_v46 = vpop.f32.mrf.mxu1 }
 0x34d   : > { %v3064_v5 = vadd.f32 %v3063_v12, %v2975_v42 }
 0x34e   : > { %v4045_v16 = vpop.f32.mrf.mxu0  ;;  %v4066_v49 = vpop.f32.mrf.mxu1 }
 0x350   : > { %v2978_v25 = vpop.f32.mrf.mxu0 }
 0x352   : > { %v4046_v53 = vpop.f32.mrf.mxu0 }
 0x368   : > { %v3276_v18 = vpop.f32.mrf.mxu1 }
 0x36a   : > { %v4105_v57 = vpop.f32.mrf.mxu1 }
 0x36c   : > { %v3169_v52 = vpop.f32.mrf.mxu0  ;;  %v3279_v6 = vpop.f32.mrf.mxu1 }
 0x36d   : > { %v3175_v7 = vadd.f32 %v3169_v52, %v3064_v5 }
 0x36e   : > { %v4085_v8 = vpop.f32.mrf.mxu0  ;;  %v4106_v2 = vpop.f32.mrf.mxu1 }
 0x36f   : > { %v3282_v9 = vadd.f32 %v3276_v18, %v3175_v7 }
 0x370   : > { %v3172_v35 = vpop.f32.mrf.mxu0 }
 0x371   : > { %v3290_v4 = vadd.f32 %v3974_v10, %v3282_v9 }
 0x372   : > { %v4086_v17 = vpop.f32.mrf.mxu0 }
 0x373   : > { %v3291_v38 = vmax.f32 %v3290_v4, 0.0 }
 0x375   : > { %v3292_v11 = vpack.c.bf16 %v3291_v38, %v3291_v38 }
 0x377   : > { %4116 = vmatmul.mubr.msk.bf16.vlgmr.msra.gmra.mxu0 %vm3328_vm4, %v3292_v11 }
 0x437   : > { %v3370_v30 = vpop.f32.mrf.mxu0 }
 0x438   : > { %v3371_v44 = vadd.f32 %v3975_v41, %v3370_v30 }
 0x439   : > { %v4117_v3 = vpop.f32.mrf.mxu0 }
 0x43a   : > { %v3377_v36 = vsel %vm3376_vm5, %v3371_v44, -inf }
 0x43b   : > { %3378 = vmax.xlane.f32.xlu0 %v3377_v36  ;;  %v3373_v37 = vpop.f32.mrf.mxu0 }
 0x43d   : > { %v4118_v59 = vpop.f32.mrf.mxu0 }
 0x4c4   : > { %v3379_v60 = vpop.xlane.xlu0 %3378 }
 0x4c5   : > { %v3380_v13 = vsub.f32 %v3371_v44, %v3379_v60 }
 0x4c7   : > { %v3381_v61 = vmul.f32 1.442695, %v3380_v13 }
 0x4c9   : > { %4567 = vpow2.f32 %v3381_v61 }
 0x4d6   : > { %v4568_v34 = vpop.eup %4567 }
 0x4d7   : > { %v3383_v62 = vsel %vm3376_vm5, %v4568_v34, 0.0 }
 0x4d8   : > { %3384 = vadd.xlane.f32.xlu0 %v3383_v62 }
 0x561   : > { %v3385_v50 = vpop.xlane.xlu0 %3384 }
 0x562   : > { %4569 = vlog2.f32 %v3385_v50 }
 0x56f   : > { %v4570_v51 = vpop.eup %4569 }
 0x570   : > { %v3387_v47 = vmul.f32 0.6931472, %v4570_v51 }
 0x572   : > { %v3388_v54 = vsub.f32 %v3380_v13, %v3387_v47 }
 0x574   : > { %3389 = vst.msk [vmem:[%s328_s21] sm:$0xff] %vm3376_vm5, %v3388_v54 }
 0x575   : > { %4584 = shalt.err (!%p4581_p3)
}
 0x576   : > { %s4585_s16 = scalar_lea.hbm %s3402_s28, 128  ;;  %s4589_s21 = scalar_lea.hbm %s5953_s9, 256 }
 0x577   : > { %p4586_p4 = scmp.ne.s32.totalorder %s3402_s28, %s4585_s16  ;;  %p4590_p9 = scmp.lt.s32.totalorder %s3402_s28, %s5953_s9 }
 0x578   : > { %p4591_p10 = scmp.lt.s32.totalorder %s4589_s21, %s4585_s16 }
 0x579   : > { %p4587_p7 = pnand %p4586_p4, %p4725_p5 }
 0x57a   : > { %p4592_p11 = por %p4591_p10, %p4590_p9 }
 0x57b   : > { %p4588_p8 = pneg %p4587_p7 }
 0x57d   : > { %p4593_p12 = pnand %p4592_p11, %p4588_p8 }
 0x57f   : > { %4596 = shalt.err (!%p4593_p12)
}
 0x580   : > { %4119 = dma.vmem_to_hbm [thread:$0]  (%p4725_p5), %s3405_s22, 128, %s3402_s28, %s3391_s14  }
 0x581 PF: > { %p4125_p13 = scmp.ge.s32.totalorder %s4631_s12, 2  ;;  %s3416_s25 = sand.u32 1, %s4619_s30  }
 0x582   : > { %s3417_s26 = scalar_lea.sflag [#allocation4], %s3416_s25 }
 0x583   : > { %p4122_p0 = pnand %p4125_p13, %p4729_p6 }
 0x585   : > { %p4123_p1 = pneg %p4122_p0 }
 0x587   : > { %4614 = dma.done.wait (%p4123_p1), %s3417_s26, 128  }
 0x588   : > { %4616 = vsyncadd (%p4123_p1), %s3417_s26, 4294967168  ;;  %p19_p2 = scmp.ge.s32.totalorder %s4712_s15, 4   ;;  %s5979_s30 = smov %s4623_s10 }
 0x589   : > { %s5980_s10 = smov %s4627_s11  ;;  %s5981_s11 = smov %s4723_s18 }
 0x58a   : > { %s5982_s12 = smov %s4712_s15  ;;  %21 = sbr.rel (!%p19_p2) target bundleno = 3 (0x3), region = 99 }
 0x58f   :  { %3422 = vsyncpa [#allocation4], 1 }
 0x590   :  { %3424 = vsyncpa [#allocation4 + $0x1], 1 }

</bundles_post_ra>
